<compile_context>
chip_gen: v7x
topology: tpu7x:2x2x1
jax: 0.10.0
libtpu: 0.0.40
codegen_flags: <defaults>
</compile_context>

<pallas_src>
import jax
import jax.numpy as jnp
from jax import lax
from jax.experimental import pallas as pl
from jax.experimental.pallas import tpu as pltpu

K = 3          # kernel_size == up_kernel_size == 3
EPS = 1e-5     # InstanceNorm eps (PyTorch default)
CPAD = 8       # channels AND matmul-M padded to one full sublane tile


# ----------------------------------------------------------------------------
# Fused kernel:  (ConvT -> IN -> PReLU) -> (Conv -> IN -> PReLU)
# One grid step == one batch element.
# ----------------------------------------------------------------------------
def _make_fused_kernel(wp, L, LP, off, inv_count, wout):
    """Both stages are a 'valid' 3x3 conv over a padded, channel-first,
    row-flattened grid of lane pitch `wp`.  A flattened output index j maps to
    (row=j//wp, col=j%wp); columns >= `wout` are wrap-around junk that is
    masked out of the InstanceNorm statistics and zeroed before feeding
    stage 2 (they become the left/right halo of the next row)."""
    tap_shifts = [kh * wp + kw for kh in range(K) for kw in range(K)]

    def kernel(alpha_ref, x_ref, w1_ref, w2_ref, o_ref, up_scr):
        # alpha_ref : (2,)              SMEM (scalar prefetch) PReLU alphas
        # x_ref     : (1, CPAD, LP)     zero-stuffed + halo-padded stage-1 input
        # w1_ref    : (9, CPAD, CPAD)   per-tap ConvTranspose weights [t, co, ci]
        # w2_ref    : (9, CPAD, CPAD)   per-tap Conv weights [t, co, ci]
        # o_ref     : (1, CPAD, L)      lane-dense flattened output (pitch wp)
        # up_scr    : (CPAD, LP) VMEM   padded stage-2 input (stage-1 result)
        col = lax.broadcasted_iota(jnp.int32, (1, L), 1) % wp
        valid = col < wout                                    # (1, L) bool

        def conv_stage(slab_fn, w_ref):
            # 9 accumulate matmuls: acc += w_tap(8,8) @ slab(8,L).
            # Accumulator stays in f32 vregs; every slab hits the MXU once.
            acc = jnp.dot(w_ref[0], slab_fn(tap_shifts[0]),
                          preferred_element_type=jnp.float32)
            for t in range(1, K * K):
                acc = acc + jnp.dot(w_ref[t], slab_fn(tap_shifts[t]),
                                    preferred_element_type=jnp.float32)
            return acc

        def inorm_prelu(acc, alpha):
            # Single-pass masked InstanceNorm (no affine).  The conv bias is
            # intentionally absent: a per-channel constant is exactly cancelled
            # by the mean subtraction and leaves the variance unchanged.
            accm = jnp.where(valid, acc, 0.0)
            s1 = jnp.sum(accm, axis=1, keepdims=True)          # (CPAD, 1)
            s2 = jnp.sum(accm * accm, axis=1, keepdims=True)   # (CPAD, 1)
            mean = s1 * inv_count
            var = s2 * inv_count - mean * mean
            xn = (acc - mean) * lax.rsqrt(var + EPS)
            return jnp.where(xn > 0, xn, alpha * xn)           # PReLU

        # --- stage 1: ConvTranspose (as conv on zero-stuffed input) + IN + PReLU
        acc1 = conv_stage(lambda s: x_ref[0, :, s:s + L], w1_ref)
        up = inorm_prelu(acc1, alpha_ref[0])      # rows cout..7 are exact zeros

        # Place stage-1 result into the padded stage-2 grid.  Only the
        # top/bottom halo lane ranges need explicit zeros; masking the junk
        # pitch columns of the interior provides the left/right halos.
        up_scr[:, 0:off] = jnp.zeros((CPAD, off), jnp.float32)
        up_scr[:, off + L:LP] = jnp.zeros((CPAD, LP - off - L), jnp.float32)
        up_scr[:, off:off + L] = jnp.where(valid, up, 0.0)

        # --- stage 2: 3x3 conv + IN + PReLU
        acc2 = conv_stage(lambda s: up_scr[:, s:s + L], w2_ref)
        out = inorm_prelu(acc2, alpha_ref[1])
        o_ref[0] = out.astype(o_ref.dtype)

    return kernel


# ----------------------------------------------------------------------------
# Wrapper: layout / weight packing (cheap XLA ops on tiny arrays)
# ----------------------------------------------------------------------------
def unet_out_forward(x_nchw, params, stride):
    """Pallas forward. x_nchw: (N, Cin, H, W) -> (N, Cout, H*stride, W*stride)."""
    n, cin, h, w = x_nchw.shape
    cout = params["wt"].shape[1]
    assert cin <= CPAD and cout <= CPAD

    pad = K // 2                       # = 1
    halo = K - 1 - pad                 # leading pad of the equivalent conv (=1)
    hout, wout = h * stride, w * stride
    wp = wout + (K - 1)                # lane pitch of both padded grids
    L = hout * wp                      # output lanes per channel (pitch rows)
    rows_ext = hout + K                # extra rows so tap reads never run OOB
    LP = rows_ext * wp                 # flattened padded-grid length
    off = wp + 1                       # flat offset of grid position (1, 1)
    assert LP >= L + (K - 1) * wp + (K - 1)   # max tap shift fits the grid

    # Stage-1 input: zero-stuff (transposed conv) + conv halo, channel-first,
    # channels padded to CPAD, rows flattened at pitch `wp`.  One XLA scatter.
    xz = jnp.zeros((n, CPAD, rows_ext, wp), jnp.float32)
    xz = xz.at[:, :cin,
               halo:halo + stride * h:stride,
               halo:halo + stride * w:stride].set(x_nchw.astype(jnp.float32))
    xz = xz.reshape(n, CPAD, LP)

    # Per-tap weights, (9, CPAD, CPAD) with [t = kh*3+kw, co, ci]; unused
    # rows/cols are zero.  ConvTranspose == conv with flipped, in/out-swapped w.
    wf = jnp.flip(params["wt"], axis=(2, 3))                     # (cin,cout,K,K)
    w1 = wf.transpose(2, 3, 1, 0).reshape(K * K, cout, cin)
    w1 = jnp.pad(w1, ((0, 0), (0, CPAD - cout), (0, CPAD - cin))).astype(jnp.float32)

    w2 = params["wc"].transpose(2, 3, 0, 1).reshape(K * K, cout, cout)
    w2 = jnp.pad(w2, ((0, 0), (0, CPAD - cout), (0, CPAD - cout))).astype(jnp.float32)

    # Conv biases are NOT passed: exactly cancelled by InstanceNorm (no affine).
    alphas = jnp.stack([jnp.asarray(params["alpha1"], jnp.float32),
                        jnp.asarray(params["alpha2"], jnp.float32)])

    kernel = _make_fused_kernel(wp, L, LP, off, 1.0 / float(hout * wout), wout)

    out_flat = pl.pallas_call(
        kernel,
        out_shape=jax.ShapeDtypeStruct((n, CPAD, L), jnp.float32),
        grid_spec=pltpu.PrefetchScalarGridSpec(
            num_scalar_prefetch=1,                       # alphas -> SMEM
            grid=(n,),
            in_specs=[
                pl.BlockSpec((1, CPAD, LP), lambda i, a: (i, 0, 0)),
                pl.BlockSpec((K * K, CPAD, CPAD), lambda i, a: (0, 0, 0)),
                pl.BlockSpec((K * K, CPAD, CPAD), lambda i, a: (0, 0, 0)),
            ],
            out_specs=pl.BlockSpec((1, CPAD, L), lambda i, a: (i, 0, 0)),
            scratch_shapes=[
                pltpu.VMEM((CPAD, LP), jnp.float32),     # padded `up` grid
            ],
        ),
        compiler_params=pltpu.CompilerParams(
            dimension_semantics=("parallel",)),          # batch across TCs (v7x)
    )(alphas, xz, w1, w2)

    # Free bitcast reshape + single slice: strip padded channels, pitch junk.
    return out_flat.reshape(n, CPAD, hout, wp)[:, :cout, :, :wout]


# ----------------------------------------------------------------------------
# Pure-JAX (XLA) reference for validation (keeps the biases -> also validates
# that dropping them in the kernel is exact).
# ----------------------------------------------------------------------------
def _instance_norm_ref(x_nchw):
    mean = jnp.mean(x_nchw, axis=(2, 3), keepdims=True)
    var = jnp.mean((x_nchw - mean) ** 2, axis=(2, 3), keepdims=True)
    return (x_nchw - mean) * lax.rsqrt(var + EPS)


def _prelu_ref(x, alpha):
    return jnp.where(x > 0, x, alpha * x)


def reference_forward(x_nchw, params, stride):
    pad = K // 2
    w_flip = jnp.flip(params["wt"], axis=(2, 3)).transpose(1, 0, 2, 3)  # (Cout,Cin,K,K)
    lo = K - 1 - pad
    hi = K - 1 - pad + (stride - 1)
    y = lax.conv_general_dilated(
        x_nchw, w_flip, window_strides=(1, 1),
        padding=((lo, hi), (lo, hi)),
        lhs_dilation=(stride, stride),
        dimension_numbers=("NCHW", "OIHW", "NCHW"))
    y = y + params["bt"].reshape(1, -1, 1, 1)
    y = _prelu_ref(_instance_norm_ref(y), params["alpha1"])

    z = lax.conv_general_dilated(
        y, params["wc"], window_strides=(1, 1),
        padding=((pad, pad), (pad, pad)),
        dimension_numbers=("NCHW", "OIHW", "NCHW"))
    z = z + params["bc"].reshape(1, -1, 1, 1)
    z = _prelu_ref(_instance_norm_ref(z), params["alpha2"])
    return z


# ----------------------------------------------------------------------------
if __name__ == "__main__":
    # spatial_dims=2, in_channels_layer=8, out_channels_layer=4, strides=2
    N, CIN, COUT, H, W, STRIDE = 2, 8, 4, 16, 16, 2

    key = jax.random.PRNGKey(0)
    k_x, k_wt, k_bt, k_wc, k_bc = jax.random.split(key, 5)

    x = jax.random.normal(k_x, (N, CIN, H, W), dtype=jnp.float32)
    params = {
        # ConvTranspose2d weight: (in_channels, out_channels, kH, kW)
        "wt": 0.1 * jax.random.normal(k_wt, (CIN, COUT, K, K), dtype=jnp.float32),
        "bt": 0.1 * jax.random.normal(k_bt, (COUT,), dtype=jnp.float32),
        # Conv2d weight: (out_channels, in_channels, kH, kW)
        "wc": 0.1 * jax.random.normal(k_wc, (COUT, COUT, K, K), dtype=jnp.float32),
        "bc": 0.1 * jax.random.normal(k_bc, (COUT,), dtype=jnp.float32),
        # PReLU default init
        "alpha1": jnp.float32(0.25),
        "alpha2": jnp.float32(0.25),
    }

    fwd = jax.jit(unet_out_forward, static_argnums=2)
    out = jax.block_until_ready(fwd(x, params, STRIDE))
    assert out.shape == (N, COUT, H * STRIDE, W * STRIDE), out.shape

    ref = jax.block_until_ready(reference_forward(x, params, STRIDE))
    max_err = float(jnp.max(jnp.abs(out - ref)))
    assert jnp.allclose(out, ref, rtol=1e-3, atol=1e-3), max_err

    print("KERNEL_OK")
</pallas_src>

<mosaic_0001>
module attributes {stable_mosaic.version = 11 : i64} {
  func.func @kernel(%arg0: i32, %arg1: memref<2xf32, #tpu.memory_space<smem>>, %arg2: memref<1x8x1190xf32, #tpu.memory_space<vmem>>, %arg3: memref<9x8x8xf32, #tpu.memory_space<vmem>>, %arg4: memref<9x8x8xf32, #tpu.memory_space<vmem>>, %arg5: memref<1x8x1088xf32, #tpu.memory_space<vmem>>, %arg6: memref<8x1190xf32, #tpu.memory_space<vmem>>) attributes {dimension_semantics = [#tpu.dimension_semantics<parallel>], iteration_bounds = array<i64: 2>, scalar_prefetch = 1 : i64, scratch_operands = 1 : i64, tpu.core_type = #tpu.core_type<tc>, window_params = [{transform_indices = @transform_0, window_bounds = array<i64: 1, 8, 1190>}, {pipeline_mode = #tpu.pipeline_mode<synchronous>, transform_indices = @transform_1, window_bounds = array<i64: 9, 8, 8>}, {pipeline_mode = #tpu.pipeline_mode<synchronous>, transform_indices = @transform_2, window_bounds = array<i64: 9, 8, 8>}, {transform_indices = @transform_3, window_bounds = array<i64: 1, 8, 1088>}]} {
    %0 = tpu.iota {dimensions = array<i32: 1>} : vector<1x1088xi32>
    %c34_i32 = arith.constant 34 : i32
    %c0_i32 = arith.constant 0 : i32
    %1 = arith.cmpi eq, %c34_i32, %c0_i32 : i32
    %c1_i32 = arith.constant 1 : i32
    %2 = arith.select %1, %c1_i32, %c34_i32 : i32
    %3 = vector.broadcast %2 : i32 to vector<1x1088xi32>
    %4 = arith.remsi %0, %3 : vector<1x1088xi32>
    %c0_i32_0 = arith.constant 0 : i32
    %5 = vector.broadcast %c0_i32_0 : i32 to vector<1x1088xi32>
    %6 = arith.cmpi ne, %4, %5 : vector<1x1088xi32>
    %c0_i32_1 = arith.constant 0 : i32
    %7 = vector.broadcast %c0_i32_1 : i32 to vector<1x1088xi32>
    %8 = arith.cmpi slt, %4, %7 : vector<1x1088xi32>
    %c0_i32_2 = arith.constant 0 : i32
    %9 = arith.cmpi slt, %2, %c0_i32_2 : i32
    %10 = vector.broadcast %9 : i1 to vector<1x1088xi1>
    %11 = vector.broadcast %10 : vector<1x1088xi1> to vector<1x1088xi1>
    %12 = arith.xori %8, %11 : vector<1x1088xi1>
    %13 = arith.andi %12, %6 : vector<1x1088xi1>
    %14 = vector.broadcast %2 : i32 to vector<1x1088xi32>
    %15 = arith.addi %4, %14 : vector<1x1088xi32>
    %16 = arith.select %13, %15, %4 : vector<1x1088xi1>, vector<1x1088xi32>
    %c32_i32 = arith.constant 32 : i32
    %17 = vector.broadcast %c32_i32 : i32 to vector<1x1088xi32>
    %18 = arith.cmpi slt, %16, %17 : vector<1x1088xi32>
    %c0 = arith.constant 0 : index
    %c0_3 = arith.constant 0 : index
    %c0_4 = arith.constant 0 : index
    %19 = vector.load %arg3[%c0, %c0_3, %c0_4] : memref<9x8x8xf32, #tpu.memory_space<vmem>>, vector<1x8x8xf32>
    %20 = vector.shape_cast %19 : vector<1x8x8xf32> to vector<8x8xf32>
    %c0_5 = arith.constant 0 : index
    %c0_6 = arith.constant 0 : index
    %c0_7 = arith.constant 0 : index
    %21 = vector.load %arg2[%c0_5, %c0_6, %c0_7] : memref<1x8x1190xf32, #tpu.memory_space<vmem>>, vector<1x8x1088xf32>
    %22 = vector.shape_cast %21 : vector<1x8x1088xf32> to vector<8x1088xf32>
    %cst = arith.constant dense<0.000000e+00> : vector<8x1088xf32>
    %23 = tpu.matmul %20, %22, %cst {dimension_numbers = #tpu.dot_dimension_numbers<[1], [0], [0], [1], [0, 0, 1, 1], [], []>} : vector<8x8xf32>, vector<8x1088xf32>, vector<8x1088xf32> -> vector<8x1088xf32>
    %c1 = arith.constant 1 : index
    %c0_8 = arith.constant 0 : index
    %c0_9 = arith.constant 0 : index
    %24 = vector.load %arg3[%c1, %c0_8, %c0_9] : memref<9x8x8xf32, #tpu.memory_space<vmem>>, vector<1x8x8xf32>
    %25 = vector.shape_cast %24 : vector<1x8x8xf32> to vector<8x8xf32>
    %c0_10 = arith.constant 0 : index
    %c0_11 = arith.constant 0 : index
    %c1_12 = arith.constant 1 : index
    %26 = vector.load %arg2[%c0_10, %c0_11, %c1_12] : memref<1x8x1190xf32, #tpu.memory_space<vmem>>, vector<1x8x1088xf32>
    %27 = vector.shape_cast %26 : vector<1x8x1088xf32> to vector<8x1088xf32>
    %cst_13 = arith.constant dense<0.000000e+00> : vector<8x1088xf32>
    %28 = tpu.matmul %25, %27, %cst_13 {dimension_numbers = #tpu.dot_dimension_numbers<[1], [0], [0], [1], [0, 0, 1, 1], [], []>} : vector<8x8xf32>, vector<8x1088xf32>, vector<8x1088xf32> -> vector<8x1088xf32>
    %29 = arith.addf %23, %28 : vector<8x1088xf32>
    %c2 = arith.constant 2 : index
    %c0_14 = arith.constant 0 : index
    %c0_15 = arith.constant 0 : index
    %30 = vector.load %arg3[%c2, %c0_14, %c0_15] : memref<9x8x8xf32, #tpu.memory_space<vmem>>, vector<1x8x8xf32>
    %31 = vector.shape_cast %30 : vector<1x8x8xf32> to vector<8x8xf32>
    %c0_16 = arith.constant 0 : index
    %c0_17 = arith.constant 0 : index
    %c2_18 = arith.constant 2 : index
    %32 = vector.load %arg2[%c0_16, %c0_17, %c2_18] : memref<1x8x1190xf32, #tpu.memory_space<vmem>>, vector<1x8x1088xf32>
    %33 = vector.shape_cast %32 : vector<1x8x1088xf32> to vector<8x1088xf32>
    %cst_19 = arith.constant dense<0.000000e+00> : vector<8x1088xf32>
    %34 = tpu.matmul %31, %33, %cst_19 {dimension_numbers = #tpu.dot_dimension_numbers<[1], [0], [0], [1], [0, 0, 1, 1], [], []>} : vector<8x8xf32>, vector<8x1088xf32>, vector<8x1088xf32> -> vector<8x1088xf32>
    %35 = arith.addf %29, %34 : vector<8x1088xf32>
    %c3 = arith.constant 3 : index
    %c0_20 = arith.constant 0 : index
    %c0_21 = arith.constant 0 : index
    %36 = vector.load %arg3[%c3, %c0_20, %c0_21] : memref<9x8x8xf32, #tpu.memory_space<vmem>>, vector<1x8x8xf32>
    %37 = vector.shape_cast %36 : vector<1x8x8xf32> to vector<8x8xf32>
    %c0_22 = arith.constant 0 : index
    %c0_23 = arith.constant 0 : index
    %c34 = arith.constant 34 : index
    %38 = vector.load %arg2[%c0_22, %c0_23, %c34] : memref<1x8x1190xf32, #tpu.memory_space<vmem>>, vector<1x8x1088xf32>
    %39 = vector.shape_cast %38 : vector<1x8x1088xf32> to vector<8x1088xf32>
    %cst_24 = arith.constant dense<0.000000e+00> : vector<8x1088xf32>
    %40 = tpu.matmul %37, %39, %cst_24 {dimension_numbers = #tpu.dot_dimension_numbers<[1], [0], [0], [1], [0, 0, 1, 1], [], []>} : vector<8x8xf32>, vector<8x1088xf32>, vector<8x1088xf32> -> vector<8x1088xf32>
    %41 = arith.addf %35, %40 : vector<8x1088xf32>
    %c4 = arith.constant 4 : index
    %c0_25 = arith.constant 0 : index
    %c0_26 = arith.constant 0 : index
    %42 = vector.load %arg3[%c4, %c0_25, %c0_26] : memref<9x8x8xf32, #tpu.memory_space<vmem>>, vector<1x8x8xf32>
    %43 = vector.shape_cast %42 : vector<1x8x8xf32> to vector<8x8xf32>
    %c0_27 = arith.constant 0 : index
    %c0_28 = arith.constant 0 : index
    %c35 = arith.constant 35 : index
    %44 = vector.load %arg2[%c0_27, %c0_28, %c35] : memref<1x8x1190xf32, #tpu.memory_space<vmem>>, vector<1x8x1088xf32>
    %45 = vector.shape_cast %44 : vector<1x8x1088xf32> to vector<8x1088xf32>
    %cst_29 = arith.constant dense<0.000000e+00> : vector<8x1088xf32>
    %46 = tpu.matmul %43, %45, %cst_29 {dimension_numbers = #tpu.dot_dimension_numbers<[1], [0], [0], [1], [0, 0, 1, 1], [], []>} : vector<8x8xf32>, vector<8x1088xf32>, vector<8x1088xf32> -> vector<8x1088xf32>
    %47 = arith.addf %41, %46 : vector<8x1088xf32>
    %c5 = arith.constant 5 : index
    %c0_30 = arith.constant 0 : index
    %c0_31 = arith.constant 0 : index
    %48 = vector.load %arg3[%c5, %c0_30, %c0_31] : memref<9x8x8xf32, #tpu.memory_space<vmem>>, vector<1x8x8xf32>
    %49 = vector.shape_cast %48 : vector<1x8x8xf32> to vector<8x8xf32>
    %c0_32 = arith.constant 0 : index
    %c0_33 = arith.constant 0 : index
    %c36 = arith.constant 36 : index
    %50 = vector.load %arg2[%c0_32, %c0_33, %c36] : memref<1x8x1190xf32, #tpu.memory_space<vmem>>, vector<1x8x1088xf32>
    %51 = vector.shape_cast %50 : vector<1x8x1088xf32> to vector<8x1088xf32>
    %cst_34 = arith.constant dense<0.000000e+00> : vector<8x1088xf32>
    %52 = tpu.matmul %49, %51, %cst_34 {dimension_numbers = #tpu.dot_dimension_numbers<[1], [0], [0], [1], [0, 0, 1, 1], [], []>} : vector<8x8xf32>, vector<8x1088xf32>, vector<8x1088xf32> -> vector<8x1088xf32>
    %53 = arith.addf %47, %52 : vector<8x1088xf32>
    %c6 = arith.constant 6 : index
    %c0_35 = arith.constant 0 : index
    %c0_36 = arith.constant 0 : index
    %54 = vector.load %arg3[%c6, %c0_35, %c0_36] : memref<9x8x8xf32, #tpu.memory_space<vmem>>, vector<1x8x8xf32>
    %55 = vector.shape_cast %54 : vector<1x8x8xf32> to vector<8x8xf32>
    %c0_37 = arith.constant 0 : index
    %c0_38 = arith.constant 0 : index
    %c68 = arith.constant 68 : index
    %56 = vector.load %arg2[%c0_37, %c0_38, %c68] : memref<1x8x1190xf32, #tpu.memory_space<vmem>>, vector<1x8x1088xf32>
    %57 = vector.shape_cast %56 : vector<1x8x1088xf32> to vector<8x1088xf32>
    %cst_39 = arith.constant dense<0.000000e+00> : vector<8x1088xf32>
    %58 = tpu.matmul %55, %57, %cst_39 {dimension_numbers = #tpu.dot_dimension_numbers<[1], [0], [0], [1], [0, 0, 1, 1], [], []>} : vector<8x8xf32>, vector<8x1088xf32>, vector<8x1088xf32> -> vector<8x1088xf32>
    %59 = arith.addf %53, %58 : vector<8x1088xf32>
    %c7 = arith.constant 7 : index
    %c0_40 = arith.constant 0 : index
    %c0_41 = arith.constant 0 : index
    %60 = vector.load %arg3[%c7, %c0_40, %c0_41] : memref<9x8x8xf32, #tpu.memory_space<vmem>>, vector<1x8x8xf32>
    %61 = vector.shape_cast %60 : vector<1x8x8xf32> to vector<8x8xf32>
    %c0_42 = arith.constant 0 : index
    %c0_43 = arith.constant 0 : index
    %c69 = arith.constant 69 : index
    %62 = vector.load %arg2[%c0_42, %c0_43, %c69] : memref<1x8x1190xf32, #tpu.memory_space<vmem>>, vector<1x8x1088xf32>
    %63 = vector.shape_cast %62 : vector<1x8x1088xf32> to vector<8x1088xf32>
    %cst_44 = arith.constant dense<0.000000e+00> : vector<8x1088xf32>
    %64 = tpu.matmul %61, %63, %cst_44 {dimension_numbers = #tpu.dot_dimension_numbers<[1], [0], [0], [1], [0, 0, 1, 1], [], []>} : vector<8x8xf32>, vector<8x1088xf32>, vector<8x1088xf32> -> vector<8x1088xf32>
    %65 = arith.addf %59, %64 : vector<8x1088xf32>
    %c8 = arith.constant 8 : index
    %c0_45 = arith.constant 0 : index
    %c0_46 = arith.constant 0 : index
    %66 = vector.load %arg3[%c8, %c0_45, %c0_46] : memref<9x8x8xf32, #tpu.memory_space<vmem>>, vector<1x8x8xf32>
    %67 = vector.shape_cast %66 : vector<1x8x8xf32> to vector<8x8xf32>
    %c0_47 = arith.constant 0 : index
    %c0_48 = arith.constant 0 : index
    %c70 = arith.constant 70 : index
    %68 = vector.load %arg2[%c0_47, %c0_48, %c70] : memref<1x8x1190xf32, #tpu.memory_space<vmem>>, vector<1x8x1088xf32>
    %69 = vector.shape_cast %68 : vector<1x8x1088xf32> to vector<8x1088xf32>
    %cst_49 = arith.constant dense<0.000000e+00> : vector<8x1088xf32>
    %70 = tpu.matmul %67, %69, %cst_49 {dimension_numbers = #tpu.dot_dimension_numbers<[1], [0], [0], [1], [0, 0, 1, 1], [], []>} : vector<8x8xf32>, vector<8x1088xf32>, vector<8x1088xf32> -> vector<8x1088xf32>
    %71 = arith.addf %65, %70 : vector<8x1088xf32>
    %c0_50 = arith.constant 0 : index
    %72 = memref.load %arg1[%c0_50] : memref<2xf32, #tpu.memory_space<smem>>
    %cst_51 = arith.constant 0.000000e+00 : f32
    %73 = vector.shape_cast %18 : vector<1x1088xi1> to vector<1x1088xi1>
    %74 = vector.broadcast %73 : vector<1x1088xi1> to vector<8x1088xi1>
    %75 = vector.broadcast %cst_51 : f32 to vector<8x1088xf32>
    %76 = arith.select %74, %71, %75 : vector<8x1088xi1>, vector<8x1088xf32>
    %cst_52 = arith.constant dense<0.000000e+00> : vector<8xf32>
    %77 = vector.multi_reduction <add>, %76, %cst_52 [1] : vector<8x1088xf32> to vector<8xf32>
    %78 = vector.shape_cast %77 : vector<8xf32> to vector<8x1xf32>
    %79 = arith.mulf %76, %76 : vector<8x1088xf32>
    %cst_53 = arith.constant dense<0.000000e+00> : vector<8xf32>
    %80 = vector.multi_reduction <add>, %79, %cst_53 [1] : vector<8x1088xf32> to vector<8xf32>
    %81 = vector.shape_cast %80 : vector<8xf32> to vector<8x1xf32>
    %cst_54 = arith.constant 9.765625E-4 : f32
    %82 = vector.broadcast %cst_54 : f32 to vector<8x1xf32>
    %83 = arith.mulf %78, %82 : vector<8x1xf32>
    %cst_55 = arith.constant 9.765625E-4 : f32
    %84 = vector.broadcast %cst_55 : f32 to vector<8x1xf32>
    %85 = arith.mulf %81, %84 : vector<8x1xf32>
    %86 = arith.mulf %83, %83 : vector<8x1xf32>
    %87 = arith.subf %85, %86 : vector<8x1xf32>
    %88 = vector.broadcast %83 : vector<8x1xf32> to vector<8x1088xf32>
    %89 = arith.subf %71, %88 : vector<8x1088xf32>
    %cst_56 = arith.constant 9.99999974E-6 : f32
    %90 = vector.broadcast %cst_56 : f32 to vector<8x1xf32>
    %91 = arith.addf %87, %90 : vector<8x1xf32>
    %92 = math.rsqrt %91 : vector<8x1xf32>
    %93 = vector.broadcast %92 : vector<8x1xf32> to vector<8x1088xf32>
    %94 = arith.mulf %89, %93 : vector<8x1088xf32>
    %cst_57 = arith.constant 0.000000e+00 : f32
    %95 = vector.broadcast %cst_57 : f32 to vector<8x1088xf32>
    %96 = arith.cmpf ogt, %94, %95 : vector<8x1088xf32>
    %97 = vector.broadcast %72 : f32 to vector<8x1088xf32>
    %98 = arith.mulf %97, %94 : vector<8x1088xf32>
    %99 = arith.select %96, %94, %98 : vector<8x1088xi1>, vector<8x1088xf32>
    %cst_58 = arith.constant 0.000000e+00 : f32
    %100 = vector.broadcast %cst_58 : f32 to vector<8x35xf32>
    %c0_59 = arith.constant 0 : index
    %c0_60 = arith.constant 0 : index
    %101 = vector.load %arg6[%c0_59, %c0_60] : memref<8x1190xf32, #tpu.memory_space<vmem>>, vector<8x35xf32>
    tpu.vector_store %arg6[%c0_59, %c0_60], %100 {strides = array<i32>} : memref<8x1190xf32, #tpu.memory_space<vmem>>, vector<8x35xf32>,
    %cst_61 = arith.constant 0.000000e+00 : f32
    %102 = vector.broadcast %cst_61 : f32 to vector<8x67xf32>
    %c0_62 = arith.constant 0 : index
    %c1123 = arith.constant 1123 : index
    %103 = vector.load %arg6[%c0_62, %c1123] : memref<8x1190xf32, #tpu.memory_space<vmem>>, vector<8x67xf32>
    tpu.vector_store %arg6[%c0_62, %c1123], %102 {strides = array<i32>} : memref<8x1190xf32, #tpu.memory_space<vmem>>, vector<8x67xf32>,
    %cst_63 = arith.constant 0.000000e+00 : f32
    %104 = vector.shape_cast %18 : vector<1x1088xi1> to vector<1x1088xi1>
    %105 = vector.broadcast %104 : vector<1x1088xi1> to vector<8x1088xi1>
    %106 = vector.broadcast %cst_63 : f32 to vector<8x1088xf32>
    %107 = arith.select %105, %99, %106 : vector<8x1088xi1>, vector<8x1088xf32>
    %c0_64 = arith.constant 0 : index
    %c35_65 = arith.constant 35 : index
    %108 = vector.load %arg6[%c0_64, %c35_65] : memref<8x1190xf32, #tpu.memory_space<vmem>>, vector<8x1088xf32>
    tpu.vector_store %arg6[%c0_64, %c35_65], %107 {strides = array<i32>} : memref<8x1190xf32, #tpu.memory_space<vmem>>, vector<8x1088xf32>,
    %c0_66 = arith.constant 0 : index
    %c0_67 = arith.constant 0 : index
    %c0_68 = arith.constant 0 : index
    %109 = vector.load %arg4[%c0_66, %c0_67, %c0_68] : memref<9x8x8xf32, #tpu.memory_space<vmem>>, vector<1x8x8xf32>
    %110 = vector.shape_cast %109 : vector<1x8x8xf32> to vector<8x8xf32>
    %c0_69 = arith.constant 0 : index
    %c0_70 = arith.constant 0 : index
    %111 = vector.load %arg6[%c0_69, %c0_70] : memref<8x1190xf32, #tpu.memory_space<vmem>>, vector<8x1088xf32>
    %cst_71 = arith.constant dense<0.000000e+00> : vector<8x1088xf32>
    %112 = tpu.matmul %110, %111, %cst_71 {dimension_numbers = #tpu.dot_dimension_numbers<[1], [0], [0], [1], [0, 0, 1, 1], [], []>} : vector<8x8xf32>, vector<8x1088xf32>, vector<8x1088xf32> -> vector<8x1088xf32>
    %c1_72 = arith.constant 1 : index
    %c0_73 = arith.constant 0 : index
    %c0_74 = arith.constant 0 : index
    %113 = vector.load %arg4[%c1_72, %c0_73, %c0_74] : memref<9x8x8xf32, #tpu.memory_space<vmem>>, vector<1x8x8xf32>
    %114 = vector.shape_cast %113 : vector<1x8x8xf32> to vector<8x8xf32>
    %c0_75 = arith.constant 0 : index
    %c1_76 = arith.constant 1 : index
    %115 = vector.load %arg6[%c0_75, %c1_76] : memref<8x1190xf32, #tpu.memory_space<vmem>>, vector<8x1088xf32>
    %cst_77 = arith.constant dense<0.000000e+00> : vector<8x1088xf32>
    %116 = tpu.matmul %114, %115, %cst_77 {dimension_numbers = #tpu.dot_dimension_numbers<[1], [0], [0], [1], [0, 0, 1, 1], [], []>} : vector<8x8xf32>, vector<8x1088xf32>, vector<8x1088xf32> -> vector<8x1088xf32>
    %117 = arith.addf %112, %116 : vector<8x1088xf32>
    %c2_78 = arith.constant 2 : index
    %c0_79 = arith.constant 0 : index
    %c0_80 = arith.constant 0 : index
    %118 = vector.load %arg4[%c2_78, %c0_79, %c0_80] : memref<9x8x8xf32, #tpu.memory_space<vmem>>, vector<1x8x8xf32>
    %119 = vector.shape_cast %118 : vector<1x8x8xf32> to vector<8x8xf32>
    %c0_81 = arith.constant 0 : index
    %c2_82 = arith.constant 2 : index
    %120 = vector.load %arg6[%c0_81, %c2_82] : memref<8x1190xf32, #tpu.memory_space<vmem>>, vector<8x1088xf32>
    %cst_83 = arith.constant dense<0.000000e+00> : vector<8x1088xf32>
    %121 = tpu.matmul %119, %120, %cst_83 {dimension_numbers = #tpu.dot_dimension_numbers<[1], [0], [0], [1], [0, 0, 1, 1], [], []>} : vector<8x8xf32>, vector<8x1088xf32>, vector<8x1088xf32> -> vector<8x1088xf32>
    %122 = arith.addf %117, %121 : vector<8x1088xf32>
    %c3_84 = arith.constant 3 : index
    %c0_85 = arith.constant 0 : index
    %c0_86 = arith.constant 0 : index
    %123 = vector.load %arg4[%c3_84, %c0_85, %c0_86] : memref<9x8x8xf32, #tpu.memory_space<vmem>>, vector<1x8x8xf32>
    %124 = vector.shape_cast %123 : vector<1x8x8xf32> to vector<8x8xf32>
    %c0_87 = arith.constant 0 : index
    %c34_88 = arith.constant 34 : index
    %125 = vector.load %arg6[%c0_87, %c34_88] : memref<8x1190xf32, #tpu.memory_space<vmem>>, vector<8x1088xf32>
    %cst_89 = arith.constant dense<0.000000e+00> : vector<8x1088xf32>
    %126 = tpu.matmul %124, %125, %cst_89 {dimension_numbers = #tpu.dot_dimension_numbers<[1], [0], [0], [1], [0, 0, 1, 1], [], []>} : vector<8x8xf32>, vector<8x1088xf32>, vector<8x1088xf32> -> vector<8x1088xf32>
    %127 = arith.addf %122, %126 : vector<8x1088xf32>
    %c4_90 = arith.constant 4 : index
    %c0_91 = arith.constant 0 : index
    %c0_92 = arith.constant 0 : index
    %128 = vector.load %arg4[%c4_90, %c0_91, %c0_92] : memref<9x8x8xf32, #tpu.memory_space<vmem>>, vector<1x8x8xf32>
    %129 = vector.shape_cast %128 : vector<1x8x8xf32> to vector<8x8xf32>
    %c0_93 = arith.constant 0 : index
    %c35_94 = arith.constant 35 : index
    %130 = vector.load %arg6[%c0_93, %c35_94] : memref<8x1190xf32, #tpu.memory_space<vmem>>, vector<8x1088xf32>
    %cst_95 = arith.constant dense<0.000000e+00> : vector<8x1088xf32>
    %131 = tpu.matmul %129, %130, %cst_95 {dimension_numbers = #tpu.dot_dimension_numbers<[1], [0], [0], [1], [0, 0, 1, 1], [], []>} : vector<8x8xf32>, vector<8x1088xf32>, vector<8x1088xf32> -> vector<8x1088xf32>
    %132 = arith.addf %127, %131 : vector<8x1088xf32>
    %c5_96 = arith.constant 5 : index
    %c0_97 = arith.constant 0 : index
    %c0_98 = arith.constant 0 : index
    %133 = vector.load %arg4[%c5_96, %c0_97, %c0_98] : memref<9x8x8xf32, #tpu.memory_space<vmem>>, vector<1x8x8xf32>
    %134 = vector.shape_cast %133 : vector<1x8x8xf32> to vector<8x8xf32>
    %c0_99 = arith.constant 0 : index
    %c36_100 = arith.constant 36 : index
    %135 = vector.load %arg6[%c0_99, %c36_100] : memref<8x1190xf32, #tpu.memory_space<vmem>>, vector<8x1088xf32>
    %cst_101 = arith.constant dense<0.000000e+00> : vector<8x1088xf32>
    %136 = tpu.matmul %134, %135, %cst_101 {dimension_numbers = #tpu.dot_dimension_numbers<[1], [0], [0], [1], [0, 0, 1, 1], [], []>} : vector<8x8xf32>, vector<8x1088xf32>, vector<8x1088xf32> -> vector<8x1088xf32>
    %137 = arith.addf %132, %136 : vector<8x1088xf32>
    %c6_102 = arith.constant 6 : index
    %c0_103 = arith.constant 0 : index
    %c0_104 = arith.constant 0 : index
    %138 = vector.load %arg4[%c6_102, %c0_103, %c0_104] : memref<9x8x8xf32, #tpu.memory_space<vmem>>, vector<1x8x8xf32>
    %139 = vector.shape_cast %138 : vector<1x8x8xf32> to vector<8x8xf32>
    %c0_105 = arith.constant 0 : index
    %c68_106 = arith.constant 68 : index
    %140 = vector.load %arg6[%c0_105, %c68_106] : memref<8x1190xf32, #tpu.memory_space<vmem>>, vector<8x1088xf32>
    %cst_107 = arith.constant dense<0.000000e+00> : vector<8x1088xf32>
    %141 = tpu.matmul %139, %140, %cst_107 {dimension_numbers = #tpu.dot_dimension_numbers<[1], [0], [0], [1], [0, 0, 1, 1], [], []>} : vector<8x8xf32>, vector<8x1088xf32>, vector<8x1088xf32> -> vector<8x1088xf32>
    %142 = arith.addf %137, %141 : vector<8x1088xf32>
    %c7_108 = arith.constant 7 : index
    %c0_109 = arith.constant 0 : index
    %c0_110 = arith.constant 0 : index
    %143 = vector.load %arg4[%c7_108, %c0_109, %c0_110] : memref<9x8x8xf32, #tpu.memory_space<vmem>>, vector<1x8x8xf32>
    %144 = vector.shape_cast %143 : vector<1x8x8xf32> to vector<8x8xf32>
    %c0_111 = arith.constant 0 : index
    %c69_112 = arith.constant 69 : index
    %145 = vector.load %arg6[%c0_111, %c69_112] : memref<8x1190xf32, #tpu.memory_space<vmem>>, vector<8x1088xf32>
    %cst_113 = arith.constant dense<0.000000e+00> : vector<8x1088xf32>
    %146 = tpu.matmul %144, %145, %cst_113 {dimension_numbers = #tpu.dot_dimension_numbers<[1], [0], [0], [1], [0, 0, 1, 1], [], []>} : vector<8x8xf32>, vector<8x1088xf32>, vector<8x1088xf32> -> vector<8x1088xf32>
    %147 = arith.addf %142, %146 : vector<8x1088xf32>
    %c8_114 = arith.constant 8 : index
    %c0_115 = arith.constant 0 : index
    %c0_116 = arith.constant 0 : index
    %148 = vector.load %arg4[%c8_114, %c0_115, %c0_116] : memref<9x8x8xf32, #tpu.memory_space<vmem>>, vector<1x8x8xf32>
    %149 = vector.shape_cast %148 : vector<1x8x8xf32> to vector<8x8xf32>
    %c0_117 = arith.constant 0 : index
    %c70_118 = arith.constant 70 : index
    %150 = vector.load %arg6[%c0_117, %c70_118] : memref<8x1190xf32, #tpu.memory_space<vmem>>, vector<8x1088xf32>
    %cst_119 = arith.constant dense<0.000000e+00> : vector<8x1088xf32>
    %151 = tpu.matmul %149, %150, %cst_119 {dimension_numbers = #tpu.dot_dimension_numbers<[1], [0], [0], [1], [0, 0, 1, 1], [], []>} : vector<8x8xf32>, vector<8x1088xf32>, vector<8x1088xf32> -> vector<8x1088xf32>
    %152 = arith.addf %147, %151 : vector<8x1088xf32>
    %c1_120 = arith.constant 1 : index
    %153 = memref.load %arg1[%c1_120] : memref<2xf32, #tpu.memory_space<smem>>
    %cst_121 = arith.constant 0.000000e+00 : f32
    %154 = vector.shape_cast %18 : vector<1x1088xi1> to vector<1x1088xi1>
    %155 = vector.broadcast %154 : vector<1x1088xi1> to vector<8x1088xi1>
    %156 = vector.broadcast %cst_121 : f32 to vector<8x1088xf32>
    %157 = arith.select %155, %152, %156 : vector<8x1088xi1>, vector<8x1088xf32>
    %cst_122 = arith.constant dense<0.000000e+00> : vector<8xf32>
    %158 = vector.multi_reduction <add>, %157, %cst_122 [1] : vector<8x1088xf32> to vector<8xf32>
    %159 = vector.shape_cast %158 : vector<8xf32> to vector<8x1xf32>
    %160 = arith.mulf %157, %157 : vector<8x1088xf32>
    %cst_123 = arith.constant dense<0.000000e+00> : vector<8xf32>
    %161 = vector.multi_reduction <add>, %160, %cst_123 [1] : vector<8x1088xf32> to vector<8xf32>
    %162 = vector.shape_cast %161 : vector<8xf32> to vector<8x1xf32>
    %cst_124 = arith.constant 9.765625E-4 : f32
    %163 = vector.broadcast %cst_124 : f32 to vector<8x1xf32>
    %164 = arith.mulf %159, %163 : vector<8x1xf32>
    %cst_125 = arith.constant 9.765625E-4 : f32
    %165 = vector.broadcast %cst_125 : f32 to vector<8x1xf32>
    %166 = arith.mulf %162, %165 : vector<8x1xf32>
    %167 = arith.mulf %164, %164 : vector<8x1xf32>
    %168 = arith.subf %166, %167 : vector<8x1xf32>
    %169 = vector.broadcast %164 : vector<8x1xf32> to vector<8x1088xf32>
    %170 = arith.subf %152, %169 : vector<8x1088xf32>
    %cst_126 = arith.constant 9.99999974E-6 : f32
    %171 = vector.broadcast %cst_126 : f32 to vector<8x1xf32>
    %172 = arith.addf %168, %171 : vector<8x1xf32>
    %173 = math.rsqrt %172 : vector<8x1xf32>
    %174 = vector.broadcast %173 : vector<8x1xf32> to vector<8x1088xf32>
    %175 = arith.mulf %170, %174 : vector<8x1088xf32>
    %cst_127 = arith.constant 0.000000e+00 : f32
    %176 = vector.broadcast %cst_127 : f32 to vector<8x1088xf32>
    %177 = arith.cmpf ogt, %175, %176 : vector<8x1088xf32>
    %178 = vector.broadcast %153 : f32 to vector<8x1088xf32>
    %179 = arith.mulf %178, %175 : vector<8x1088xf32>
    %180 = arith.select %177, %175, %179 : vector<8x1088xi1>, vector<8x1088xf32>
    %c0_128 = arith.constant 0 : index
    %c0_129 = arith.constant 0 : index
    %c0_130 = arith.constant 0 : index
    %181 = vector.load %arg5[%c0_128, %c0_129, %c0_130] : memref<1x8x1088xf32, #tpu.memory_space<vmem>>, vector<1x8x1088xf32>
    %182 = vector.shape_cast %181 : vector<1x8x1088xf32> to vector<8x1088xf32>
    %183 = vector.shape_cast %180 : vector<8x1088xf32> to vector<1x8x1088xf32>
    tpu.vector_store %arg5[%c0_128, %c0_129, %c0_130], %183 {strides = array<i32>} : memref<1x8x1088xf32, #tpu.memory_space<vmem>>, vector<1x8x1088xf32>,
    return
  }
  func.func @transform_0(%arg0: i32, %arg1: memref<2xf32, #tpu.memory_space<smem>>) -> (i32, i32, i32) {
    %c0_i32 = arith.constant 0 : i32
    %c0_i32_0 = arith.constant 0 : i32
    %c0_i32_1 = arith.constant 0 : i32
    return %arg0, %c0_i32, %c0_i32_0 : i32, i32, i32
  }
  func.func @transform_1(%arg0: i32, %arg1: memref<2xf32, #tpu.memory_space<smem>>) -> (i32, i32, i32) {
    %c0_i32 = arith.constant 0 : i32
    %c0_i32_0 = arith.constant 0 : i32
    %c0_i32_1 = arith.constant 0 : i32
    %c0_i32_2 = arith.constant 0 : i32
    return %c0_i32, %c0_i32_0, %c0_i32_1 : i32, i32, i32
  }
  func.func @transform_2(%arg0: i32, %arg1: memref<2xf32, #tpu.memory_space<smem>>) -> (i32, i32, i32) {
    %c0_i32 = arith.constant 0 : i32
    %c0_i32_0 = arith.constant 0 : i32
    %c0_i32_1 = arith.constant 0 : i32
    %c0_i32_2 = arith.constant 0 : i32
    return %c0_i32, %c0_i32_0, %c0_i32_1 : i32, i32, i32
  }
  func.func @transform_3(%arg0: i32, %arg1: memref<2xf32, #tpu.memory_space<smem>>) -> (i32, i32, i32) {
    %c0_i32 = arith.constant 0 : i32
    %c0_i32_0 = arith.constant 0 : i32
    %c0_i32_1 = arith.constant 0 : i32
    return %arg0, %c0_i32, %c0_i32_0 : i32, i32, i32
  }
}

</mosaic_0001>

<bundles_post_ra>
// kernel: unet_out_forward.1
= control target key start
LH: loop header
LB: loop body
LE: loop exit
PB: predicated region body
PF: predicated region fallthrough
CT: control target
= control target key end

     0   :  { %s9563_s0 = inlined_call_operand.vmem [shape: f32[2], index: 0, kind: input, shape index: {}]   ;;  %s9564_s1 = inlined_call_operand.vmem [shape: f32[2,8,1190], index: 1, kind: input, shape index: {}]   ;;  %s9565_s2 = inlined_call_operand.vmem [shape: f32[9,8,8], index: 2, kind: input, shape index: {}]   ;;  %s9566_s3 = inlined_call_operand.vmem [shape: f32[9,8,8], index: 3, kind: input, shape index: {}]   ;;  %s9567_s4 = inlined_call_operand.vmem [shape: f32[2,8,1088], index: 4, kind: output, shape index: {}]  }
   0x1   :  { %s9_s17 = sshll.u32 %s9563_s0, 4  ;;  %s10_s17 = int_to_ptr.vmem [resolvable:$true] %s9_s17 }
   0x2   :  { %s8375_s18 = scalar_lea.vmem %s10_s17, 16  ;;  %p8380_p1 = scmp.lt.s32.totalorder %s10_s17, %s10_s17 }
   0x3   :  { %p8376_p0 = scmp.ne.s32.totalorder %s10_s17, %s8375_s18  ;;  %p8381_p2 = scmp.lt.s32.totalorder %s8375_s18, %s8375_s18 }
   0x5   :  { %p8382_p3 = por %p8381_p2, %p8380_p1 }
   0x7   :  { %p8383_p4 = pnand %p8382_p3, %p8376_p0 }
   0x9   :  { %8386 = shalt.err (!%p8383_p4)  }
   0xa   :  { %s8397_s19 = smov [#allocation4]  }
   0xb   :  { %12 = dma.vmem_to_smem %s10_s17, 16, %s8397_s19, [#allocation3] }
   0xc   :  { %8391 = dma.done.wait [#allocation3], 16 }
   0xd   :  { %8392 = vsyncadd [#allocation3], 4294967280 }
   0xe   :  { %14 = sfence }
   0xf   :  { %s8437_s20 = smov 0  }
  0x10 LB: > { %s7929_s0 = sadd.s32 4294967295, %s8395_s20   ;;  %p7933_p5 = scmp.ge.s32.totalorder %s8395_s20, 1  ;;  %s8395_s20 = sphi %s8437_s20, %s20_s20  }
  0x11   : > { %p144_p6 = scmp.lt.s32.totalorder %s8395_s20, 3 }
  0x13   : > { %p145_p7 = pnand %p7933_p5, %p144_p6 }
  0x14   : > { %p168_p8 = scmp.lt.s32.totalorder (!%p145_p7), %s7929_s0, 1  ;;  %v8398_v0 = vmov (!%p145_p7), 0.0   ;;  %s8399_s25 = smov (!%p145_p7), 127   ;;  %vm380_vm0 = vcmask (!%p145_p7), 1039360   ;;  %v7936_v16 = vld [vmem:[%s9565_s2 + $0x8] sm:$0xff] (!%p145_p7)  ;;  %vm9578_vm1 = vcmask (!%p145_p7), 64512  }
  0x15   : > { %148 = sbr.rel (%p145_p7) target bundleno = 1526 (0x5f6), region = 32  ;;  %466 = vmatprep.mubr.f32.mxu0 (!%p145_p7), %v8398_v0  ;;  %4275 = vmatprep.mubr.f32.mxu1 (!%p145_p7), %v8398_v0  ;;  %s8400_s26 = smov (!%p145_p7), 126   ;;  %vm9575_vm2 = vmmov (!%p145_p7), 0   ;;  %v341_v34 = vld [vmem:[%s9565_s2] sm:$0xff] (!%p145_p7)  ;;  %vm9574_vm3 = vcmask (!%p145_p7), 1031168   ;;  %v7947_v48 = vld [vmem:[%s9565_s2 + $0x10] sm:$0xff] (!%p145_p7) }
  0x16   : > { %s8401_s27 = smov (!%p145_p7), 94   ;;  %s8402_s28 = smov (!%p145_p7), 93   ;;  %vm9573_vm4 = vcmask (!%p145_p7), 769024   ;;  %vm9572_vm5 = vcmask (!%p145_p7), 760832   ;;  %vm9571_vm6 = vcmask (!%p145_p7), 752640   ;;  %vm9570_vm7 = vcmask (!%p145_p7), 490496  }
  0x17   : > { %s8403_s29 = smov (!%p145_p7), 92   ;;  %s8404_s30 = smov (!%p145_p7), 60   ;;  %vm9569_vm8 = vcmask (!%p145_p7), 482304   ;;  %vm9568_vm9 = vcmask (!%p145_p7), 474112  }
  0x18   : > { %s8405_s5 = smov (!%p145_p7), 59   ;;  %s8406_s8 = smov (!%p145_p7), 58  }
  0x19   : > { %s3970_s7 = sld [smem:[#allocation4]] (!%p145_p7)  ;;  %s8408_s9 = smov (!%p145_p7), 35  }
  0x1c   : > { %s9705_s0 = smov (!%p168_p8, %s7929_s0), 1 }
  0x1d   : > { %s8331_s21 = smul.u32 80, %s9705_s0 }
  0x1e   : > { %s8332_s22 = smul.u32 72, %s9705_s0 }
  0x1f   : > { %s8453_s24 = scalar_lea.vmem %s9564_s1, %s8331_s21  ;;  %s8042_s21 = sld [smem:[#allocation4 + $0x1]] }
  0x20   : > { %v8456_v1 = vld [vmem:[%s8453_s24 + $0x8] sm:$0xff]  ;;  %v8459_v2 = vld [vmem:[%s8453_s24] sm:$0xff]  ;;  %v8466_v3 = vld [vmem:[%s8453_s24 + $0x10] sm:$0xff]  ;;  %s177_s0 = scalar_lea.vmem %s9567_s4, %s8332_s22 }
  0x21   : > { %364 = vrot.lane.b32.xlu0 %v8456_v1, %s8399_s25  ;;  %362 = vrot.lane.b32.xlu1 %v8459_v2, %s8399_s25  ;;  %v8469_v4 = vld [vmem:[%s8453_s24 + $0x18] sm:$0xff]  ;;  %v8476_v5 = vld [vmem:[%s8453_s24 + $0x20] sm:$0xff] }
  0x22   : > { %v8479_v6 = vld [vmem:[%s8453_s24 + $0x28] sm:$0xff]  ;;  %v8486_v7 = vld [vmem:[%s8453_s24 + $0x30] sm:$0xff]  ;;  %v8489_v8 = vld [vmem:[%s8453_s24 + $0x38] sm:$0xff] }
  0x23   : > { %v8496_v9 = vld [vmem:[%s8453_s24 + $0x40] sm:$0xff]  ;;  %v8591_v10 = vld [vmem:[%s8453_s24 + $0x48] sm:$0xff] }
  0x25   : > { %366 = vrot.lane.b32.xlu0 %v8466_v3, %s8399_s25  ;;  %368 = vrot.lane.b32.xlu1 %v8469_v4, %s8399_s25 }
  0x29   : > { %370 = vrot.lane.b32.xlu0 %v8476_v5, %s8399_s25  ;;  %372 = vrot.lane.b32.xlu1 %v8479_v6, %s8399_s25 }
  0x2d   : > { %374 = vrot.lane.b32.xlu0 %v8486_v7, %s8399_s25  ;;  %376 = vrot.lane.b32.xlu1 %v8489_v8, %s8399_s25 }
  0x31   : > { %378 = vrot.lane.b32.xlu0 %v8496_v9, %s8399_s25  ;;  %1117 = vrot.lane.b32.xlu1 %v8456_v1, %s8400_s26 }
  0x35   : > { %1119 = vrot.lane.b32.xlu0 %v8466_v3, %s8400_s26  ;;  %1115 = vrot.lane.b32.xlu1 %v8459_v2, %s8400_s26 }
  0x39   : > { %1121 = vrot.lane.b32.xlu0 %v8469_v4, %s8400_s26  ;;  %1123 = vrot.lane.b32.xlu1 %v8476_v5, %s8400_s26 }
  0x3d   : > { %1125 = vrot.lane.b32.xlu0 %v8479_v6, %s8400_s26  ;;  %1127 = vrot.lane.b32.xlu1 %v8486_v7, %s8400_s26 }
  0x41   : > { %1129 = vrot.lane.b32.xlu0 %v8489_v8, %s8400_s26  ;;  %1131 = vrot.lane.b32.xlu1 %v8496_v9, %s8400_s26 }
  0x45   : > { %1521 = vrot.lane.b32.xlu0 %v8456_v1, %s8401_s27  ;;  %1523 = vrot.lane.b32.xlu1 %v8466_v3, %s8401_s27 }
  0x49   : > { %1519 = vrot.lane.b32.xlu0 %v8459_v2, %s8401_s27  ;;  %1525 = vrot.lane.b32.xlu1 %v8469_v4, %s8401_s27 }
  0x4d   : > { %1527 = vrot.lane.b32.xlu0 %v8476_v5, %s8401_s27  ;;  %1529 = vrot.lane.b32.xlu1 %v8479_v6, %s8401_s27 }
  0x51   : > { %1531 = vrot.lane.b32.xlu0 %v8486_v7, %s8401_s27  ;;  %1533 = vrot.lane.b32.xlu1 %v8489_v8, %s8401_s27 }
  0x55   : > { %1535 = vrot.lane.b32.xlu0 %v8496_v9, %s8401_s27  ;;  %1925 = vrot.lane.b32.xlu1 %v8456_v1, %s8402_s28 }
  0x59   : > { %1927 = vrot.lane.b32.xlu0 %v8466_v3, %s8402_s28  ;;  %1923 = vrot.lane.b32.xlu1 %v8459_v2, %s8402_s28 }
  0x5d   : > { %1929 = vrot.lane.b32.xlu0 %v8469_v4, %s8402_s28  ;;  %1931 = vrot.lane.b32.xlu1 %v8476_v5, %s8402_s28 }
  0x61   : > { %1933 = vrot.lane.b32.xlu0 %v8479_v6, %s8402_s28  ;;  %1935 = vrot.lane.b32.xlu1 %v8486_v7, %s8402_s28 }
  0x65   : > { %1937 = vrot.lane.b32.xlu0 %v8489_v8, %s8402_s28  ;;  %1939 = vrot.lane.b32.xlu1 %v8496_v9, %s8402_s28 }
  0x69   : > { %2329 = vrot.lane.b32.xlu0 %v8456_v1, %s8403_s29  ;;  %2331 = vrot.lane.b32.xlu1 %v8466_v3, %s8403_s29 }
  0x6d   : > { %2327 = vrot.lane.b32.xlu0 %v8459_v2, %s8403_s29  ;;  %2333 = vrot.lane.b32.xlu1 %v8469_v4, %s8403_s29 }
  0x71   : > { %2335 = vrot.lane.b32.xlu0 %v8476_v5, %s8403_s29  ;;  %2337 = vrot.lane.b32.xlu1 %v8479_v6, %s8403_s29 }
  0x75   : > { %2339 = vrot.lane.b32.xlu0 %v8486_v7, %s8403_s29  ;;  %2341 = vrot.lane.b32.xlu1 %v8489_v8, %s8403_s29 }
  0x79   : > { %2343 = vrot.lane.b32.xlu0 %v8496_v9, %s8403_s29  ;;  %2753 = vrot.lane.b32.xlu1 %v8456_v1, %s8404_s30 }
  0x7d   : > { %2755 = vrot.lane.b32.xlu0 %v8466_v3, %s8404_s30  ;;  %2751 = vrot.lane.b32.xlu1 %v8459_v2, %s8404_s30 }
  0x81   : > { %2757 = vrot.lane.b32.xlu0 %v8469_v4, %s8404_s30  ;;  %2759 = vrot.lane.b32.xlu1 %v8476_v5, %s8404_s30 }
  0x85   : > { %2761 = vrot.lane.b32.xlu0 %v8479_v6, %s8404_s30  ;;  %2763 = vrot.lane.b32.xlu1 %v8486_v7, %s8404_s30 }
  0x89   : > { %2765 = vrot.lane.b32.xlu0 %v8489_v8, %s8404_s30  ;;  %2767 = vrot.lane.b32.xlu1 %v8496_v9, %s8404_s30 }
  0x8d   : > { %2769 = vrot.lane.b32.xlu0 %v8591_v10, %s8404_s30  ;;  %3160 = vrot.lane.b32.xlu1 %v8456_v1, %s8405_s5 }
  0x91   : > { %3162 = vrot.lane.b32.xlu0 %v8466_v3, %s8405_s5  ;;  %3158 = vrot.lane.b32.xlu1 %v8459_v2, %s8405_s5 }
  0x93   : > { %v365_v11 = vpop.permute.xlu0 %364  ;;  %v363_v12 = vpop.permute.xlu1 %362 }
  0x94   : > { %v381_v17 = vsel %vm380_vm0, %v363_v12, %v365_v11 }
  0x95   : > { %3164 = vrot.lane.b32.xlu0 %v8469_v4, %s8405_s5  ;;  %3166 = vrot.lane.b32.xlu1 %v8476_v5, %s8405_s5 }
  0x97   : > { %v367_v13 = vpop.permute.xlu0 %366  ;;  %v369_v14 = vpop.permute.xlu1 %368 }
  0x98   : > { %v382_v15 = vsel %vm380_vm0, %v365_v11, %v367_v13  ;;  %v383_v21 = vsel %vm380_vm0, %v367_v13, %v369_v14 }
  0x99   : > { %402 = vmatprep.subr.mxu0 %v382_v15  ;;  %3168 = vrot.lane.b32.xlu0 %v8479_v6, %s8405_s5 }
  0x9a   : > { %403 = vmatpush1.msra.mxu0 %v381_v17  ;;  %3170 = vrot.lane.b32.xlu1 %v8486_v7, %s8405_s5 }
  0x9b   : > { %v371_v18 = vpop.permute.xlu0 %370  ;;  %7937 = vmatmul.mubr.msk.f32.vlgmr.msra.gmra.mrb[0].mxu0 %vm9578_vm1, %v7936_v16  ;;  %v373_v19 = vpop.permute.xlu1 %372 }
  0x9c   : > { %v384_v20 = vsel %vm380_vm0, %v369_v14, %v371_v18  ;;  %537 = vmatprep.mubr.f32.mxu0 %v8398_v0  ;;  %v385_v25 = vsel %vm380_vm0, %v371_v18, %v373_v19 }
  0x9d   : > { %473 = vmatprep.subr.mxu0 %v384_v20  ;;  %3172 = vrot.lane.b32.xlu0 %v8489_v8, %s8405_s5 }
  0x9e   : > { %474 = vmatpush1.msra.mxu0 %v383_v21  ;;  %3174 = vrot.lane.b32.xlu1 %v8496_v9, %s8405_s5 }
  0x9f   : > { %v375_v22 = vpop.permute.xlu0 %374  ;;  %7938 = vmatmul.mubr.msk.f32.vlgmr.msra.gmra.mrb[2].mxu0 %vm9578_vm1, %v7936_v16  ;;  %v377_v23 = vpop.permute.xlu1 %376 }
  0xa0   : > { %v386_v24 = vsel %vm380_vm0, %v373_v19, %v375_v22  ;;  %608 = vmatprep.mubr.f32.mxu0 %v8398_v0  ;;  %v387_v29 = vsel %vm380_vm0, %v375_v22, %v377_v23 }
  0xa1   : > { %544 = vmatprep.subr.mxu0 %v386_v24  ;;  %3176 = vrot.lane.b32.xlu0 %v8591_v10, %s8405_s5 }
  0xa2   : > { %545 = vmatpush1.msra.mxu0 %v385_v25  ;;  %3567 = vrot.lane.b32.xlu1 %v8456_v1, %s8406_s8 }
  0xa3   : > { %v379_v26 = vpop.permute.xlu0 %378  ;;  %7939 = vmatmul.mubr.msk.f32.vlgmr.msra.gmra.mrb[4].mxu0 %vm9578_vm1, %v7936_v16  ;;  %v1118_v27 = vpop.permute.xlu1 %1117 }
  0xa4   : > { %v388_v28 = vsel %vm380_vm0, %v377_v23, %v379_v26  ;;  %679 = vmatprep.mubr.f32.mxu0 %v8398_v0  ;;  %v7959_v23 = vld [vmem:[%s9565_s2 + $0x20] sm:$0xff] }
  0xa5   : > { %615 = vmatprep.subr.mxu0 %v388_v28  ;;  %3569 = vrot.lane.b32.xlu0 %v8466_v3, %s8406_s8 }
  0xa6   : > { %616 = vmatpush1.msra.mxu0 %v387_v29  ;;  %3565 = vrot.lane.b32.xlu1 %v8459_v2, %s8406_s8 }
  0xa7   : > { %7940 = vmatmul.mubr.msk.f32.vlgmr.msra.gmra.mrb[6].mxu0 %vm9578_vm1, %v7936_v16  ;;  %8081 = vmatprep.subr.mxu0 %v8398_v0  ;;  %v1120_v30 = vpop.permute.xlu0 %1119  ;;  %v1116_v31 = vpop.permute.xlu1 %1115 }
  0xa8   : > { %8082 = vmatpush3.msra.mxu0 %v379_v26  ;;  %8083 = vmatprep.mubr.msk.f32.mxu0 %vm9575_vm2, %v8398_v0  ;;  %v1135_v41 = vsel %vm9574_vm3, %v1118_v27, %v1120_v30  ;;  %v1134_v45 = vsel %vm9574_vm3, %v1116_v31, %v1118_v27 }
  0xa9   : > { %759 = vmatprep.subr.mxu0 %v8456_v1  ;;  %3571 = vrot.lane.b32.xlu0 %v8469_v4, %s8406_s8 }
  0xaa   : > { %3573 = vrot.lane.b32.xlu1 %v8476_v5, %s8406_s8 }
  0xab   : > { %8084 = vmatmul.mubr.msk.f32.vlgmr.msra.gmra.mrb[8].mxu0 %vm9578_vm1, %v7936_v16  ;;  %v1122_v32 = vpop.permute.xlu0 %1121  ;;  %v1124_v33 = vpop.permute.xlu1 %1123 }
  0xac   : > { %760 = vmatpush1.msra.mxu0 %v8459_v2  ;;  %823 = vmatprep.mubr.f32.mxu0 %v8398_v0  ;;  %v1137_v44 = vsel %vm9574_vm3, %v1122_v32, %v1124_v33  ;;  %v1136_v50 = vsel %vm9574_vm3, %v1120_v30, %v1122_v32 }
  0xad   : > { %830 = vmatprep.subr.mxu0 %v8469_v4  ;;  %3575 = vrot.lane.b32.xlu0 %v8479_v6, %s8406_s8  ;;  %v7953_v4 = vld [vmem:[%s9565_s2 + $0x18] sm:$0xff] }
  0xae   : > { %3577 = vrot.lane.b32.xlu1 %v8486_v7, %s8406_s8 }
  0xaf   : > { %7942 = vmatmul.mubr.msk.f32.vlgmr.msra.gmra.mrb[0].mxu0 %vm9578_vm1, %v341_v34  ;;  %v1126_v35 = vpop.permute.xlu0 %1125  ;;  %v1128_v36 = vpop.permute.xlu1 %1127 }
  0xb0   : > { %831 = vmatpush1.msra.mxu0 %v8466_v3  ;;  %894 = vmatprep.mubr.f32.mxu0 %v8398_v0  ;;  %v1139_v49 = vsel %vm9574_vm3, %v1126_v35, %v1128_v36  ;;  %v1138_v54 = vsel %vm9574_vm3, %v1124_v33, %v1126_v35 }
  0xb1   : > { %901 = vmatprep.subr.mxu0 %v8479_v6  ;;  %3579 = vrot.lane.b32.xlu0 %v8489_v8, %s8406_s8 }
  0xb2   : > { %3581 = vrot.lane.b32.xlu1 %v8496_v9, %s8406_s8 }
  0xb3   : > { %7943 = vmatmul.mubr.msk.f32.vlgmr.msra.gmra.mrb[2].mxu0 %vm9578_vm1, %v341_v34  ;;  %v1130_v37 = vpop.permute.xlu0 %1129  ;;  %v1132_v38 = vpop.permute.xlu1 %1131 }
  0xb4   : > { %902 = vmatpush1.msra.mxu0 %v8476_v5  ;;  %965 = vmatprep.mubr.f32.mxu0 %v8398_v0  ;;  %v1141_v53 = vsel %vm9574_vm3, %v1130_v37, %v1132_v38  ;;  %v1140_v57 = vsel %vm9574_vm3, %v1128_v36, %v1130_v37 }
  0xb5   : > { %972 = vmatprep.subr.mxu0 %v8489_v8  ;;  %3583 = vrot.lane.b32.xlu0 %v8591_v10, %s8406_s8 }
  0xb7   : > { %7944 = vmatmul.mubr.msk.f32.vlgmr.msra.gmra.mrb[4].mxu0 %vm9578_vm1, %v341_v34  ;;  %v1522_v39 = vpop.permute.xlu0 %1521  ;;  %v8673_v40 = vpop.permute.xlu1 %1523 }
  0xb8   : > { %973 = vmatpush1.msra.mxu0 %v8486_v7  ;;  %1036 = vmatprep.mubr.f32.mxu0 %v8398_v0  ;;  %v1539_v60 = vsel %vm9573_vm4, %v1522_v39, %v8673_v40 }
  0xb9   : > { %8086 = vmatprep.subr.mxu0 %v8398_v0 }
  0xbb   : > { %7945 = vmatmul.mubr.msk.f32.vlgmr.msra.gmra.mrb[6].mxu0 %vm9578_vm1, %v341_v34  ;;  %v1520_v42 = vpop.permute.xlu0 %1519  ;;  %v1526_v43 = vpop.permute.xlu1 %1525 }
  0xbc   : > { %8087 = vmatpush3.msra.mxu0 %v8496_v9  ;;  %8088 = vmatprep.mubr.msk.f32.mxu0 %vm9575_vm2, %v8398_v0  ;;  %v1538_v1 = vsel %vm9573_vm4, %v1520_v42, %v1522_v39  ;;  %v1540_v6 = vsel %vm9573_vm4, %v8673_v40, %v1526_v43  ;;  %v7965_v40 = vld [vmem:[%s9565_s2 + $0x28] sm:$0xff] }
  0xbd   : > { %1154 = vmatprep.subr.mxu0 %v1135_v41 }
  0xbf   : > { %8089 = vmatmul.mubr.msk.f32.vlgmr.msra.gmra.mrb[8].mxu0 %vm9578_vm1, %v341_v34  ;;  %v1528_v46 = vpop.permute.xlu0 %1527  ;;  %v1530_v47 = vpop.permute.xlu1 %1529 }
  0xc0   : > { %1155 = vmatpush1.msra.mxu0 %v1134_v45  ;;  %1218 = vmatprep.mubr.f32.mxu0 %v8398_v0  ;;  %v1541_v63 = vsel %vm9573_vm4, %v1526_v43, %v1528_v46  ;;  %v1542_v10 = vsel %vm9573_vm4, %v1528_v46, %v1530_v47 }
  0xc1   : > { %1225 = vmatprep.subr.mxu0 %v1137_v44 }
  0xc3   : > { %7948 = vmatmul.mubr.msk.f32.vlgmr.msra.gmra.mrb[0].mxu0 %vm9578_vm1, %v7947_v48  ;;  %v1532_v51 = vpop.permute.xlu0 %1531  ;;  %v1534_v52 = vpop.permute.xlu1 %1533 }
  0xc4   : > { %1226 = vmatpush1.msra.mxu0 %v1136_v50  ;;  %1289 = vmatprep.mubr.f32.mxu0 %v8398_v0  ;;  %v1543_v5 = vsel %vm9573_vm4, %v1530_v47, %v1532_v51  ;;  %v1544_v13 = vsel %vm9573_vm4, %v1532_v51, %v1534_v52 }
  0xc5   : > { %1296 = vmatprep.subr.mxu0 %v1139_v49 }
  0xc7   : > { %7949 = vmatmul.mubr.msk.f32.vlgmr.msra.gmra.mrb[2].mxu0 %vm9578_vm1, %v7947_v48  ;;  %v1536_v55 = vpop.permute.xlu0 %1535  ;;  %v1926_v56 = vpop.permute.xlu1 %1925 }
  0xc8   : > { %1297 = vmatpush1.msra.mxu0 %v1138_v54  ;;  %1360 = vmatprep.mubr.f32.mxu0 %v8398_v0  ;;  %v1545_v9 = vsel %vm9573_vm4, %v1534_v52, %v1536_v55 }
  0xc9   : > { %1367 = vmatprep.subr.mxu0 %v1141_v53 }
  0xcb   : > { %7950 = vmatmul.mubr.msk.f32.vlgmr.msra.gmra.mrb[4].mxu0 %vm9578_vm1, %v7947_v48  ;;  %v8700_v58 = vpop.permute.xlu0 %1927  ;;  %v1924_v59 = vpop.permute.xlu1 %1923 }
  0xcc   : > { %1368 = vmatpush1.msra.mxu0 %v1140_v57  ;;  %1431 = vmatprep.mubr.f32.mxu0 %v8398_v0  ;;  %v1943_v16 = vsel %vm9572_vm5, %v1926_v56, %v8700_v58  ;;  %v1942_v20 = vsel %vm9572_vm5, %v1924_v59, %v1926_v56 }
  0xcd   : > { %8091 = vmatprep.subr.mxu0 %v8398_v0 }
  0xcf   : > { %7951 = vmatmul.mubr.msk.f32.vlgmr.msra.gmra.mrb[6].mxu0 %vm9578_vm1, %v7947_v48  ;;  %v1930_v61 = vpop.permute.xlu0 %1929  ;;  %v8707_v62 = vpop.permute.xlu1 %1931 }
  0xd0   : > { %8092 = vmatpush3.msra.mxu0 %v1132_v38  ;;  %8093 = vmatprep.mubr.msk.f32.mxu0 %vm9575_vm2, %v8398_v0  ;;  %v1945_v19 = vsel %vm9572_vm5, %v1930_v61, %v8707_v62  ;;  %v1944_v25 = vsel %vm9572_vm5, %v8700_v58, %v1930_v61 }
  0xd1   : > { %1558 = vmatprep.subr.mxu0 %v1539_v60 }
  0xd3   : > { %8094 = vmatmul.mubr.msk.f32.vlgmr.msra.gmra.mrb[8].mxu0 %vm9578_vm1, %v7947_v48  ;;  %v1934_v2 = vpop.permute.xlu0 %1933  ;;  %v8714_v3 = vpop.permute.xlu1 %1935 }
  0xd4   : > { %1559 = vmatpush1.msra.mxu0 %v1538_v1  ;;  %1622 = vmatprep.mubr.f32.mxu0 %v8398_v0  ;;  %v1947_v24 = vsel %vm9572_vm5, %v1934_v2, %v8714_v3  ;;  %v1946_v29 = vsel %vm9572_vm5, %v8707_v62, %v1934_v2 }
  0xd5   : > { %1629 = vmatprep.subr.mxu0 %v1541_v63 }
  0xd7   : > { %7954 = vmatmul.mubr.msk.f32.vlgmr.msra.gmra.mrb[0].mxu0 %vm9578_vm1, %v7953_v4  ;;  %v1938_v7 = vpop.permute.xlu0 %1937  ;;  %v1940_v8 = vpop.permute.xlu1 %1939 }
  0xd8   : > { %1630 = vmatpush1.msra.mxu0 %v1540_v6  ;;  %1693 = vmatprep.mubr.f32.mxu0 %v8398_v0  ;;  %v1949_v28 = vsel %vm9572_vm5, %v1938_v7, %v1940_v8  ;;  %v1948_v32 = vsel %vm9572_vm5, %v8714_v3, %v1938_v7 }
  0xd9   : > { %1700 = vmatprep.subr.mxu0 %v1543_v5 }
  0xdb   : > { %7955 = vmatmul.mubr.msk.f32.vlgmr.msra.gmra.mrb[2].mxu0 %vm9578_vm1, %v7953_v4  ;;  %v2330_v11 = vpop.permute.xlu0 %2329  ;;  %v8728_v12 = vpop.permute.xlu1 %2331 }
  0xdc   : > { %1701 = vmatpush1.msra.mxu0 %v1542_v10  ;;  %1764 = vmatprep.mubr.f32.mxu0 %v8398_v0  ;;  %v2347_v35 = vsel %vm9571_vm6, %v2330_v11, %v8728_v12  ;;  %v7977_v10 = vld [vmem:[%s9565_s2 + $0x38] sm:$0xff] }
  0xdd   : > { %1771 = vmatprep.subr.mxu0 %v1545_v9 }
  0xdf   : > { %7956 = vmatmul.mubr.msk.f32.vlgmr.msra.gmra.mrb[4].mxu0 %vm9578_vm1, %v7953_v4  ;;  %v2328_v14 = vpop.permute.xlu0 %2327  ;;  %v2334_v15 = vpop.permute.xlu1 %2333 }
  0xe0   : > { %1772 = vmatpush1.msra.mxu0 %v1544_v13  ;;  %1835 = vmatprep.mubr.f32.mxu0 %v8398_v0  ;;  %v2346_v39 = vsel %vm9571_vm6, %v2328_v14, %v2330_v11  ;;  %v2348_v42 = vsel %vm9571_vm6, %v8728_v12, %v2334_v15 }
  0xe1   : > { %8096 = vmatprep.subr.mxu0 %v8398_v0 }
  0xe3   : > { %7957 = vmatmul.mubr.msk.f32.vlgmr.msra.gmra.mrb[6].mxu0 %vm9578_vm1, %v7953_v4  ;;  %v8738_v17 = vpop.permute.xlu0 %2335  ;;  %v2338_v18 = vpop.permute.xlu1 %2337 }
  0xe4   : > { %8097 = vmatpush3.msra.mxu0 %v1536_v55  ;;  %8098 = vmatprep.mubr.msk.f32.mxu0 %vm9575_vm2, %v8398_v0  ;;  %v2349_v38 = vsel %vm9571_vm6, %v2334_v15, %v8738_v17  ;;  %v2350_v46 = vsel %vm9571_vm6, %v8738_v17, %v2338_v18  ;;  %v7971_v55 = vld [vmem:[%s9565_s2 + $0x30] sm:$0xff] }
  0xe5   : > { %1962 = vmatprep.subr.mxu0 %v1943_v16 }
  0xe7   : > { %8099 = vmatmul.mubr.msk.f32.vlgmr.msra.gmra.mrb[8].mxu0 %vm9578_vm1, %v7953_v4  ;;  %v2340_v21 = vpop.permute.xlu0 %2339  ;;  %v2342_v22 = vpop.permute.xlu1 %2341 }
  0xe8   : > { %1963 = vmatpush1.msra.mxu0 %v1942_v20  ;;  %2026 = vmatprep.mubr.f32.mxu0 %v8398_v0  ;;  %v2351_v41 = vsel %vm9571_vm6, %v2338_v18, %v2340_v21  ;;  %v2352_v49 = vsel %vm9571_vm6, %v2340_v21, %v2342_v22 }
  0xe9   : > { %2033 = vmatprep.subr.mxu0 %v1945_v19 }
  0xeb   : > { %7960 = vmatmul.mubr.msk.f32.vlgmr.msra.gmra.mrb[0].mxu0 %vm9578_vm1, %v7959_v23  ;;  %v2344_v26 = vpop.permute.xlu0 %2343  ;;  %v8755_v27 = vpop.permute.xlu1 %2753 }
  0xec   : > { %2034 = vmatpush1.msra.mxu0 %v1944_v25  ;;  %2097 = vmatprep.mubr.f32.mxu0 %v8398_v0  ;;  %v2353_v45 = vsel %vm9571_vm6, %v2342_v22, %v2344_v26 }
  0xed   : > { %2104 = vmatprep.subr.mxu0 %v1947_v24 }
  0xef   : > { %7961 = vmatmul.mubr.msk.f32.vlgmr.msra.gmra.mrb[2].mxu0 %vm9578_vm1, %v7959_v23  ;;  %v8762_v30 = vpop.permute.xlu0 %2755  ;;  %v2752_v31 = vpop.permute.xlu1 %2751 }
  0xf0   : > { %2105 = vmatpush1.msra.mxu0 %v1946_v29  ;;  %2168 = vmatprep.mubr.f32.mxu0 %v8398_v0  ;;  %v2773_v50 = vsel %vm9570_vm7, %v8755_v27, %v8762_v30  ;;  %v2772_v54 = vsel %vm9570_vm7, %v2752_v31, %v8755_v27 }
  0xf1   : > { %2175 = vmatprep.subr.mxu0 %v1949_v28 }
  0xf3   : > { %7962 = vmatmul.mubr.msk.f32.vlgmr.msra.gmra.mrb[4].mxu0 %vm9578_vm1, %v7959_v23  ;;  %v2758_v33 = vpop.permute.xlu0 %2757  ;;  %v8768_v34 = vpop.permute.xlu1 %2759 }
  0xf4   : > { %2176 = vmatpush1.msra.mxu0 %v1948_v32  ;;  %2239 = vmatprep.mubr.f32.mxu0 %v8398_v0  ;;  %v2775_v53 = vsel %vm9570_vm7, %v2758_v33, %v8768_v34  ;;  %v2774_v59 = vsel %vm9570_vm7, %v8762_v30, %v2758_v33 }
  0xf5   : > { %8101 = vmatprep.subr.mxu0 %v8398_v0 }
  0xf7   : > { %7963 = vmatmul.mubr.msk.f32.vlgmr.msra.gmra.mrb[6].mxu0 %vm9578_vm1, %v7959_v23  ;;  %v2762_v36 = vpop.permute.xlu0 %2761  ;;  %v2764_v37 = vpop.permute.xlu1 %2763 }
  0xf8   : > { %8102 = vmatpush3.msra.mxu0 %v1940_v8  ;;  %8103 = vmatprep.mubr.msk.f32.mxu0 %vm9575_vm2, %v8398_v0  ;;  %v2777_v58 = vsel %vm9570_vm7, %v2762_v36, %v2764_v37  ;;  %v2776_v61 = vsel %vm9570_vm7, %v8768_v34, %v2762_v36  ;;  %v178_v36 = vlaneseq }
  0xf9   : > { %2366 = vmatprep.subr.mxu0 %v2347_v35 }
  0xfb   : > { %8104 = vmatmul.mubr.msk.f32.vlgmr.msra.gmra.mrb[8].mxu0 %vm9578_vm1, %v7959_v23  ;;  %v2766_v43 = vpop.permute.xlu0 %2765  ;;  %v2768_v44 = vpop.permute.xlu1 %2767 }
  0xfc   : > { %2367 = vmatpush1.msra.mxu0 %v2346_v39  ;;  %2430 = vmatprep.mubr.f32.mxu0 %v8398_v0  ;;  %v2779_v60 = vsel %vm9570_vm7, %v2766_v43, %v2768_v44  ;;  %v2778_v1 = vsel %vm9570_vm7, %v2764_v37, %v2766_v43  ;;  %v179_v37 = vand.u32 127, %v178_v36 }
  0xfd   : > { %2437 = vmatprep.subr.mxu0 %v2349_v38 }
  0xfe   : > { %v180_v38 = vadd.s32 128, %v179_v37  ;;  %v181_v39 = vadd.s32 256, %v179_v37 }
  0xff   : > { %7966 = vmatmul.mubr.msk.f32.vlgmr.msra.gmra.mrb[0].mxu0 %vm9578_vm1, %v7965_v40  ;;  %v2770_v47 = vpop.permute.xlu0 %2769  ;;  %v3161_v48 = vpop.permute.xlu1 %3160 }
 0x100   : > { %2438 = vmatpush1.msra.mxu0 %v2348_v42  ;;  %2501 = vmatprep.mubr.f32.mxu0 %v8398_v0  ;;  %v2780_v5 = vsel %vm9570_vm7, %v2768_v44, %v2770_v47  ;;  %v182_v42 = vadd.s32 384, %v179_v37  ;;  %v8884_v43 = vmul.u32.u64.low 4042322161, %v180_v38  ;;  %v8885_v44 = vmul.u32.u64.high 4042322161, %v180_v38, %v8884_v43 }
 0x101   : > { %2508 = vmatprep.subr.mxu0 %v2351_v41  ;;  %v183_v47 = vadd.s32 512, %v179_v37 }
 0x103   : > { %7967 = vmatmul.mubr.msk.f32.vlgmr.msra.gmra.mrb[2].mxu0 %vm9578_vm1, %v7965_v40  ;;  %v3163_v51 = vpop.permute.xlu0 %3162  ;;  %v3159_v52 = vpop.permute.xlu1 %3158 }
 0x104   : > { %2509 = vmatpush1.msra.mxu0 %v2350_v46  ;;  %2572 = vmatprep.mubr.f32.mxu0 %v8398_v0  ;;  %v3180_v4 = vsel %vm9569_vm8, %v3161_v48, %v3163_v51  ;;  %v3179_v7 = vsel %vm9569_vm8, %v3159_v52, %v3161_v48 }
 0x105   : > { %2579 = vmatprep.subr.mxu0 %v2353_v45  ;;  %v8887_v45 = vmul.u32.u64.low 4042322161, %v181_v39  ;;  %v8888_v46 = vmul.u32.u64.high 4042322161, %v181_v39, %v8887_v45 }
 0x107   : > { %7968 = vmatmul.mubr.msk.f32.vlgmr.msra.gmra.mrb[4].mxu0 %vm9578_vm1, %v7965_v40  ;;  %v3165_v56 = vpop.permute.xlu0 %3164  ;;  %v3167_v57 = vpop.permute.xlu1 %3166 }
 0x108   : > { %2580 = vmatpush1.msra.mxu0 %v2352_v49  ;;  %2643 = vmatprep.mubr.f32.mxu0 %v8398_v0  ;;  %v3182_v6 = vsel %vm9569_vm8, %v3165_v56, %v3167_v57  ;;  %v3181_v12 = vsel %vm9569_vm8, %v3163_v51, %v3165_v56  ;;  %v8890_v48 = vmul.u32.u64.low 4042322161, %v182_v42  ;;  %v8891_v49 = vmul.u32.u64.high 4042322161, %v182_v42, %v8890_v48 }
 0x109   : > { %8106 = vmatprep.subr.mxu0 %v8398_v0  ;;  %v8893_v51 = vmul.u32.u64.low 4042322161, %v183_v47  ;;  %v8894_v52 = vmul.u32.u64.high 4042322161, %v183_v47, %v8893_v51 }
 0x10b   : > { %7969 = vmatmul.mubr.msk.f32.vlgmr.msra.gmra.mrb[6].mxu0 %vm9578_vm1, %v7965_v40  ;;  %v3169_v62 = vpop.permute.xlu0 %3168 }
 0x10c   : > { %8107 = vmatpush3.msra.mxu0 %v2344_v26  ;;  %8108 = vmatprep.mubr.msk.f32.mxu0 %vm9575_vm2, %v8398_v0  ;;  %v3171_v63 = vpop.permute.xlu1 %3170  ;;  %v3183_v16 = vsel %vm9569_vm8, %v3167_v57, %v3169_v62  ;;  %v7983_v26 = vld [vmem:[%s9565_s2 + $0x40] sm:$0xff] }
 0x10d   : > { %2793 = vmatprep.subr.mxu0 %v2773_v50  ;;  %v3184_v11 = vsel %vm9569_vm8, %v3169_v62, %v3171_v63  ;;  %v184_v50 = vadd.s32 640, %v179_v37  ;;  %v227_v62 = vshrl.u32 %v8891_v49, 5 }
 0x10f   : > { %8109 = vmatmul.mubr.msk.f32.vlgmr.msra.gmra.mrb[8].mxu0 %vm9578_vm1, %v7965_v40  ;;  %v3173_v2 = vpop.permute.xlu0 %3172  ;;  %v8881_v40 = vmul.u32.u64.low 4042322161, %v179_v37  ;;  %v8882_v41 = vmul.u32.u64.high 4042322161, %v179_v37, %v8881_v40  ;;  %v8898_v56 = vmul.u32.u64.low 4042322161, %v184_v50  ;;  %v8899_v57 = vmul.u32.u64.high 4042322161, %v184_v50, %v8898_v56 }
 0x110   : > { %2794 = vmatpush1.msra.mxu0 %v2772_v54  ;;  %2857 = vmatprep.mubr.f32.mxu0 %v8398_v0  ;;  %v3175_v3 = vpop.permute.xlu1 %3174  ;;  %v3185_v17 = vsel %vm9569_vm8, %v3171_v63, %v3173_v2  ;;  %v185_v54 = vadd.s32 768, %v179_v37 }
 0x111   : > { %2864 = vmatprep.subr.mxu0 %v2775_v53  ;;  %v3186_v15 = vsel %vm9569_vm8, %v3173_v2, %v3175_v3  ;;  %v194_v53 = vshrl.u32 %v8882_v41, 5 }
 0x113   : > { %7972 = vmatmul.mubr.msk.f32.vlgmr.msra.gmra.mrb[0].mxu0 %vm9578_vm1, %v7971_v55  ;;  %v3177_v8 = vpop.permute.xlu0 %3176 }
 0x114   : > { %2865 = vmatpush1.msra.mxu0 %v2774_v59  ;;  %2928 = vmatprep.mubr.f32.mxu0 %v8398_v0  ;;  %v3568_v9 = vpop.permute.xlu1 %3567  ;;  %v3187_v21 = vsel %vm9569_vm8, %v3175_v3, %v3177_v8  ;;  %v216_v59 = vshrl.u32 %v8888_v46, 5 }
 0x115   : > { %2935 = vmatprep.subr.mxu0 %v2777_v58  ;;  %v186_v58 = vadd.s32 896, %v179_v37 }
 0x117   : > { %7973 = vmatmul.mubr.msk.f32.vlgmr.msra.gmra.mrb[2].mxu0 %vm9578_vm1, %v7971_v55  ;;  %v3570_v13 = vpop.permute.xlu0 %3569 }
 0x118   : > { %2936 = vmatpush1.msra.mxu0 %v2776_v61  ;;  %2999 = vmatprep.mubr.f32.mxu0 %v8398_v0  ;;  %v3566_v14 = vpop.permute.xlu1 %3565  ;;  %v3587_v20 = vsel %vm9568_vm9, %v3568_v9, %v3570_v13  ;;  %v195_v61 = vmul.u32 34, %v194_v53 }
 0x119   : > { %3006 = vmatprep.subr.mxu0 %v2779_v60  ;;  %v3586_v25 = vsel %vm9568_vm9, %v3566_v14, %v3568_v9  ;;  %v187_v60 = vadd.s32 1024, %v179_v37 }
 0x11a   : > { %v196_v9 = vsub.s32 %v179_v37, %v195_v61 }
 0x11b   : > { %7974 = vmatmul.mubr.msk.f32.vlgmr.msra.gmra.mrb[4].mxu0 %vm9578_vm1, %v7971_v55  ;;  %v3572_v18 = vpop.permute.xlu0 %3571 }
 0x11c   : > { %3007 = vmatpush1.msra.mxu0 %v2778_v1  ;;  %3070 = vmatprep.mubr.f32.mxu0 %v8398_v0  ;;  %v3574_v19 = vpop.permute.xlu1 %3573  ;;  %v3588_v28 = vsel %vm9568_vm9, %v3570_v13, %v3572_v18  ;;  %v8903_v63 = vmul.u32.u64.low 4042322161, %v185_v54  ;;  %v8904_v1 = vmul.u32.u64.high 4042322161, %v185_v54, %v8903_v63  ;;  %vm287_vm10 = vcmp.ne.s32.totalorder %v196_v9, 0 }
 0x11d   : > { %8111 = vmatprep.subr.mxu0 %v8398_v0  ;;  %v3589_v24 = vsel %vm9568_vm9, %v3572_v18, %v3574_v19  ;;  %vm296_vm11 = vcmp.lt.s32.totalorder %v196_v9, 0 }
 0x11e   : > { %vm8916_vm14 = vmand %vm296_vm11, %vm287_vm10 }
 0x11f   : > { %7975 = vmatmul.mubr.msk.f32.vlgmr.msra.gmra.mrb[6].mxu0 %vm9578_vm1, %v7971_v55  ;;  %v3576_v22 = vpop.permute.xlu0 %3575 }
 0x120   : > { %8112 = vmatpush3.msra.mxu0 %v2780_v5  ;;  %8113 = vmatprep.mubr.msk.f32.mxu0 %vm9575_vm2, %v8398_v0  ;;  %v3578_v23 = vpop.permute.xlu1 %3577  ;;  %v3590_v32 = vsel %vm9568_vm9, %v3574_v19, %v3576_v22  ;;  %v217_v5 = vmul.u32 34, %v216_v59 }
 0x121   : > { %3200 = vmatprep.subr.mxu0 %v3180_v4  ;;  %v3591_v27 = vsel %vm9568_vm9, %v3576_v22, %v3578_v23  ;;  %v8906_v3 = vmul.u32.u64.low 4042322161, %v186_v58  ;;  %v8907_v4 = vmul.u32.u64.high 4042322161, %v186_v58, %v8906_v3 }
 0x122   : > { %v218_v13 = vsub.s32 %v181_v39, %v217_v5 }
 0x123   : > { %8114 = vmatmul.mubr.msk.f32.vlgmr.msra.gmra.mrb[8].mxu0 %vm9578_vm1, %v7971_v55  ;;  %v3580_v29 = vpop.permute.xlu0 %3579  ;;  %v205_v55 = vshrl.u32 %v8885_v44, 5  ;;  %v271_v19 = vshrl.u32 %v8907_v4, 5 }
 0x124   : > { %3201 = vmatpush1.msra.mxu0 %v3179_v7  ;;  %3264 = vmatprep.mubr.f32.mxu0 %v8398_v0  ;;  %v3582_v30 = vpop.permute.xlu1 %3581  ;;  %v3592_v33 = vsel %vm9568_vm9, %v3578_v23, %v3580_v29  ;;  %v8910_v7 = vmul.u32.u64.low 4042322161, %v187_v60  ;;  %v8911_v8 = vmul.u32.u64.high 4042322161, %v187_v60, %v8910_v7  ;;  %vm289_vm15 = vcmp.ne.s32.totalorder %v218_v13, 0 }
 0x125   : > { %3271 = vmatprep.subr.mxu0 %v3182_v6  ;;  %v3593_v31 = vsel %vm9568_vm9, %v3580_v29, %v3582_v30  ;;  %v206_v2 = vmul.u32 34, %v205_v55  ;;  %v238_v6 = vshrl.u32 %v8894_v52, 5 }
 0x126   : > { %v282_v22 = vshrl.u32 %v8911_v8, 5 }
 0x127   : > { %7978 = vmatmul.mubr.msk.f32.vlgmr.msra.gmra.mrb[0].mxu0 %vm9578_vm1, %v7977_v10  ;;  %v3584_v34 = vpop.permute.xlu0 %3583  ;;  %v239_v14 = vmul.u32 34, %v238_v6 }
 0x128   : > { %3272 = vmatpush1.msra.mxu0 %v3181_v12  ;;  %3335 = vmatprep.mubr.f32.mxu0 %v8398_v0  ;;  %v3594_v35 = vsel %vm9568_vm9, %v3582_v30, %v3584_v34  ;;  %v249_v12 = vshrl.u32 %v8899_v57, 5  ;;  %vm298_vm9 = vcmp.lt.s32.totalorder %v218_v13, 0 }
 0x129   : > { %3342 = vmatprep.subr.mxu0 %v3184_v11  ;;  %v207_v11 = vsub.s32 %v180_v38, %v206_v2  ;;  %vm8927_vm10 = vmand %vm298_vm9, %vm289_vm15 }
 0x12a   : > { %v250_v18 = vmul.u32 34, %v249_v12 }
 0x12b   : > { %7979 = vmatmul.mubr.msk.f32.vlgmr.msra.gmra.mrb[2].mxu0 %vm9578_vm1, %v7977_v10  ;;  %vm288_vm12 = vcmp.ne.s32.totalorder %v207_v11, 0  ;;  %vm297_vm13 = vcmp.lt.s32.totalorder %v207_v11, 0  ;;  %v315_v23 = vadd.s32 34, %v207_v11 }
 0x12c   : > { %3343 = vmatpush1.msra.mxu0 %v3183_v16  ;;  %3406 = vmatprep.mubr.f32.mxu0 %v8398_v0  ;;  %v260_v16 = vshrl.u32 %v8904_v1, 5  ;;  %vm8921_vm6 = vmand %vm297_vm13, %vm288_vm12  ;;  %v251_v30 = vsub.s32 %v184_v50, %v250_v18 }
 0x12d   : > { %3413 = vmatprep.subr.mxu0 %v3186_v15  ;;  %v324_v34 = vsel %vm8921_vm6, %v315_v23, %v207_v11 }
 0x12e   : > { %vm301_vm9 = vcmp.lt.s32.totalorder %v251_v30, 0  ;;  %vm8949_vm6 = vcmp.lt.s32.totalorder %v324_v34, 32  ;;  %v319_v46 = vadd.s32 34, %v251_v30 }
 0x12f   : > { %7980 = vmatmul.mubr.msk.f32.vlgmr.msra.gmra.mrb[4].mxu0 %vm9578_vm1, %v7977_v10 }
 0x130   : > { %3414 = vmatpush1.msra.mxu0 %v3185_v17  ;;  %3477 = vmatprep.mubr.f32.mxu0 %v8398_v0  ;;  %v314_v17 = vadd.s32 34, %v196_v9 }
 0x131   : > { %8116 = vmatprep.subr.mxu0 %v8398_v0 }
 0x133   : > { %7981 = vmatmul.mubr.msk.f32.vlgmr.msra.gmra.mrb[6].mxu0 %vm9578_vm1, %v7977_v10 }
 0x134   : > { %8117 = vmatpush3.msra.mxu0 %v3187_v21  ;;  %8118 = vmatprep.mubr.msk.f32.mxu0 %vm9575_vm2, %v8398_v0  ;;  %v240_v21 = vsub.s32 %v183_v47, %v239_v14 }
 0x135   : > { %3607 = vmatprep.subr.mxu0 %v3587_v20 }
 0x136   : > { %vm291_vm5 = vcmp.ne.s32.totalorder %v240_v21, 0  ;;  %vm300_vm12 = vcmp.lt.s32.totalorder %v240_v21, 0  ;;  %v318_v38 = vadd.s32 34, %v240_v21 }
 0x137   : > { %8119 = vmatmul.mubr.msk.f32.vlgmr.msra.gmra.mrb[8].mxu0 %vm9578_vm1, %v7977_v10  ;;  %v228_v10 = vmul.u32 34, %v227_v62 }
 0x138   : > { %3608 = vmatpush1.msra.mxu0 %v3586_v25  ;;  %3671 = vmatprep.mubr.f32.mxu0 %v8398_v0 }
 0x139   : > { %3678 = vmatprep.subr.mxu0 %v3589_v24  ;;  %v229_v15 = vsub.s32 %v182_v42, %v228_v10  ;;  %v261_v24 = vmul.u32 34, %v260_v16 }
 0x13b   : > { %7984 = vmatmul.mubr.msk.f32.vlgmr.msra.gmra.mrb[0].mxu0 %vm9578_vm1, %v7983_v26  ;;  %vm290_vm8 = vcmp.ne.s32.totalorder %v229_v15, 0  ;;  %vm299_vm7 = vcmp.lt.s32.totalorder %v229_v15, 0  ;;  %v317_v29 = vadd.s32 34, %v229_v15 }
 0x13c   : > { %3679 = vmatpush1.msra.mxu0 %v3588_v28  ;;  %3742 = vmatprep.mubr.f32.mxu0 %v8398_v0  ;;  %vm8931_vm11 = vmand %vm299_vm7, %vm290_vm8  ;;  %vm292_vm8 = vcmp.ne.s32.totalorder %v251_v30, 0 }
 0x13d   : > { %3749 = vmatprep.subr.mxu0 %v3591_v27  ;;  %v323_v27 = vsel %vm8916_vm14, %v314_v17, %v196_v9  ;;  %v326_v39 = vsel %vm8931_vm11, %v317_v29, %v229_v15  ;;  %vm8945_vm7 = vmand %vm300_vm12, %vm291_vm5 }
 0x13e   : > { %vm8937_vm13 = vcmp.lt.s32.totalorder %v323_v27, 32  ;;  %v327_v50 = vsel %vm8945_vm7, %v318_v38, %v240_v21  ;;  %vm8970_vm11 = vmand %vm301_vm9, %vm292_vm8 }
 0x13f   : > { %7985 = vmatmul.mubr.msk.f32.vlgmr.msra.gmra.mrb[2].mxu0 %vm9578_vm1, %v7983_v26  ;;  %v328_v59 = vsel %vm8970_vm11, %v319_v46, %v251_v30  ;;  %vm8990_vm8 = vcmp.lt.s32.totalorder %v327_v50, 32  ;;  %vm9577_vm11 = vcmask 523264  }
 0x140   : > { %3750 = vmatpush1.msra.mxu0 %v3590_v32  ;;  %3813 = vmatprep.mubr.f32.mxu0 %v8398_v0 }
 0x141   : > { %3820 = vmatprep.subr.mxu0 %v3593_v31  ;;  %v272_v31 = vmul.u32 34, %v271_v19 }
 0x143   : > { %7986 = vmatmul.mubr.msk.f32.vlgmr.msra.gmra.mrb[4].mxu0 %vm9578_vm1, %v7983_v26  ;;  %v273_v41 = vsub.s32 %v186_v58, %v272_v31 }
 0x144   : > { %3821 = vmatpush1.msra.mxu0 %v3592_v33  ;;  %3884 = vmatprep.mubr.f32.mxu0 %v8398_v0  ;;  %v283_v33 = vmul.u32 34, %v282_v22 }
 0x145   : > { %8121 = vmatprep.subr.mxu0 %v8398_v0  ;;  %vm294_vm12 = vcmp.ne.s32.totalorder %v273_v41, 0  ;;  %vm303_vm4 = vcmp.lt.s32.totalorder %v273_v41, 0 }
 0x146   : > { %v284_v43 = vsub.s32 %v187_v60, %v283_v33  ;;  %v321_v60 = vadd.s32 34, %v273_v41  ;;  %vm8994_vm9 = vmand %vm303_vm4, %vm294_vm12  ;;  %vm9008_vm4 = vcmp.lt.s32.totalorder %v328_v59, 32  ;;  %vm4082_vm12 = vcmask 285696  }
 0x147   : > { %7987 = vmatmul.mubr.msk.f32.vlgmr.msra.gmra.mrb[6].mxu0 %vm9578_vm1, %v7983_v26  ;;  %4083 = vst.msk [vmem:[#allocation2] sm:$0xff] %vm4082_vm12, %v8398_v0 }
 0x148   : > { %8122 = vmatpush3.msra.mxu0 %v3594_v35  ;;  %8123 = vmatprep.mubr.msk.f32.mxu0 %vm9575_vm2, %v8398_v0  ;;  %v262_v35 = vsub.s32 %v185_v54, %v261_v24  ;;  %vm295_vm2 = vcmp.ne.s32.totalorder %v284_v43, 0  ;;  %vm304_vm7 = vcmp.lt.s32.totalorder %v284_v43, 0  ;;  %v322_v3 = vadd.s32 34, %v284_v43 }
 0x149   : > { %v330_v14 = vsel %vm8994_vm9, %v321_v60, %v273_v41 }
 0x14a   : > { %vm293_vm15 = vcmp.ne.s32.totalorder %v262_v35, 0  ;;  %vm302_vm5 = vcmp.lt.s32.totalorder %v262_v35, 0  ;;  %v320_v52 = vadd.s32 34, %v262_v35 }
 0x14b   : > { %8124 = vmatmul.mubr.msk.f32.vlgmr.msra.gmra.mrb[8].mxu0 %vm9578_vm1, %v7983_v26  ;;  %v316_v26 = vadd.s32 34, %v218_v13  ;;  %vm8977_vm3 = vmand %vm302_vm5, %vm293_vm15 }
 0x14c   : > { %v329_v7 = vsel %vm8977_vm3, %v320_v52, %v262_v35  ;;  %vm9004_vm15 = vmand %vm304_vm7, %vm295_vm2  ;;  %vm9024_vm2 = vcmp.lt.s32.totalorder %v330_v14, 32 }
 0x14d   : > { %v325_v37 = vsel %vm8927_vm10, %v316_v26, %v218_v13  ;;  %vm8964_vm10 = vcmp.lt.s32.totalorder %v326_v39, 32  ;;  %vm9016_vm3 = vcmp.lt.s32.totalorder %v329_v7, 32  ;;  %v331_v18 = vsel %vm9004_vm15, %v322_v3, %v284_v43 }
 0x14e   : > { %vm8955_vm14 = vcmp.lt.s32.totalorder %v325_v37, 32  ;;  %vm9035_vm5 = vcmp.lt.s32.totalorder %v331_v18, 32 }
 0x20e   : > { %v8953_v44 = vpop.f32.mrb[0].mxu0 }
 0x20f   : > { %v3989_v47 = vsel %vm8937_vm13, %v8953_v44, 0.0  ;;  %v8962_v48 = vpop.f32.mrb[1].mxu0 }
 0x210   : > { %v4010_v53 = vmul.f32 %v3989_v47, %v3989_v47  ;;  %v3990_v54 = vsel %vm8949_vm6, %v8962_v48, 0.0 }
 0x211   : > { %v3998_v55 = vadd.f32 %v3990_v54, %v3989_v47  ;;  %v4011_v56 = vmul.f32 %v3990_v54, %v3990_v54 }
 0x212   : > { %v8981_v58 = vpop.f32.mrb[2].mxu0 }
 0x213   : > { %v4019_v61 = vadd.f32 %v4011_v56, %v4010_v53  ;;  %v3991_v62 = vsel %vm8955_vm14, %v8981_v58, 0.0  ;;  %v8988_v63 = vpop.f32.mrb[3].mxu0 }
 0x214   : > { %v3999_v4 = vadd.f32 %v3998_v55, %v3991_v62  ;;  %v4012_v5 = vmul.f32 %v3991_v62, %v3991_v62  ;;  %v3992_v6 = vsel %vm8964_vm10, %v8988_v63, 0.0 }
 0x215   : > { %v4013_v9 = vmul.f32 %v3992_v6, %v3992_v6 }
 0x216   : > { %v4020_v11 = vadd.f32 %v4019_v61, %v4012_v5  ;;  %v4000_v12 = vadd.f32 %v3999_v4, %v3992_v6  ;;  %v3815_v13 = vpop.f32.mrb[4].mxu0  ;;  %v4063_v5 = vstv %s3970_s7 }
 0x217   : > { %v3993_v15 = vsel %vm8990_vm8, %v3815_v13, 0.0  ;;  %v3817_v16 = vpop.f32.mrb[5].mxu0 }
 0x218   : > { %v4021_v19 = vadd.f32 %v4020_v11, %v4013_v9  ;;  %v4001_v20 = vadd.f32 %v4000_v12, %v3993_v15  ;;  %v4014_v21 = vmul.f32 %v3993_v15, %v3993_v15  ;;  %v3994_v22 = vsel %vm9008_vm4, %v3817_v16, 0.0 }
 0x219   : > { %v4015_v23 = vmul.f32 %v3994_v22, %v3994_v22 }
 0x21a   : > { %v4022_v25 = vadd.f32 %v4021_v19, %v4014_v21  ;;  %v4002_v26 = vadd.f32 %v4001_v20, %v3994_v22  ;;  %v9028_v27 = vpop.f32.mrb[6].mxu0 }
 0x21b   : > { %v3995_v28 = vsel %vm9016_vm3, %v9028_v27, 0.0  ;;  %v9033_v29 = vpop.f32.mrb[7].mxu0 }
 0x21c   : > { %v4023_v31 = vadd.f32 %v4022_v25, %v4015_v23  ;;  %v4003_v32 = vadd.f32 %v4002_v26, %v3995_v28  ;;  %v4016_v33 = vmul.f32 %v3995_v28, %v3995_v28  ;;  %v3996_v34 = vsel %vm9024_vm2, %v9033_v29, 0.0 }
 0x21d   : > { %v4017_v35 = vmul.f32 %v3996_v34, %v3996_v34 }
 0x21e   : > { %v4024_v37 = vadd.f32 %v4023_v31, %v4016_v33  ;;  %v4004_v38 = vadd.f32 %v4003_v32, %v3996_v34  ;;  %v9042_v39 = vpop.f32.mrb[8].mxu0 }
 0x21f   : > { %v3997_v40 = vsel %vm9035_vm5, %v9042_v39, 0.0  ;;  %v8125_v41 = vpop.f32.mrb[9].mxu0 }
 0x220   : > { %v4018_v43 = vmul.f32 %v3997_v40, %v3997_v40  ;;  %v4006_v46 = vsel %vm9577_vm11, %v3997_v40, 0.0  ;;  %v4025_v47 = vadd.f32 %v4024_v37, %v4017_v35 }
 0x221   : > { %v4007_v50 = vadd.f32 %v4006_v46, %v4004_v38 }
 0x222   : > { %v4026_v51 = vsel %vm9577_vm11, %v4018_v43, 0.0 }
 0x223   : > { %4008 = vadd.xlane.f32.xlu1 %v4007_v50  ;;  %v4027_v52 = vadd.f32 %v4026_v51, %v4025_v47 }
 0x225   : > { %4028 = vadd.xlane.f32.xlu0 %v4027_v52 }
 0x2b0   : > { %v4009_v53 = vpop.xlane.xlu1 %4008 }
 0x2b1   : > { %v4030_v54 = vmul.f32 0.0009765625, %v4009_v53 }
 0x2b2   : > { %v4029_v55 = vpop.xlane.xlu0 %4028 }
 0x2b3   : > { %v4031_v56 = vmul.f32 0.0009765625, %v4029_v55  ;;  %v4032_v57 = vmul.f32 %v4030_v54, %v4030_v54  ;;  %v4035_v61 = vsub.f32 %v8962_v48, %v4030_v54  ;;  %v4034_v62 = vsub.f32 %v8953_v44, %v4030_v54 }
 0x2b4   : > { %v4036_v2 = vsub.f32 %v8981_v58, %v4030_v54  ;;  %v4037_v3 = vsub.f32 %v8988_v63, %v4030_v54  ;;  %v4038_v6 = vsub.f32 %v3815_v13, %v4030_v54  ;;  %v4039_v7 = vsub.f32 %v3817_v16, %v4030_v54 }
 0x2b5   : > { %v4033_v59 = vsub.f32 %v4031_v56, %v4032_v57  ;;  %v4040_v18 = vsub.f32 %v9028_v27, %v4030_v54  ;;  %v4041_v13 = vsub.f32 %v9033_v29, %v4030_v54  ;;  %v4042_v29 = vsub.f32 %v9042_v39, %v4030_v54 }
 0x2b7   : > { %v4043_v60 = vadd.f32 1e-05, %v4033_v59 }
 0x2b9   : > { %8371 = vrsqrt.f32 %v4043_v60 }
 0x2c3   : > { %v8372_v4 = vpop.eup %8371 }
 0x2c4   : > { %v4046_v8 = vmul.f32 %v8372_v4, %v4035_v61  ;;  %v4045_v9 = vmul.f32 %v8372_v4, %v4034_v62  ;;  %v4047_v11 = vmul.f32 %v8372_v4, %v4036_v2  ;;  %v4048_v12 = vmul.f32 %v8372_v4, %v4037_v3 }
 0x2c5   : > { %v4049_v14 = vmul.f32 %v8372_v4, %v4038_v6  ;;  %v4050_v15 = vmul.f32 %v8372_v4, %v4039_v7  ;;  %v4051_v23 = vmul.f32 %v8372_v4, %v4040_v18  ;;  %v4052_v27 = vmul.f32 %v8372_v4, %v4041_v13 }
 0x2c6   : > { %vm4055_vm7 = vcmp.gt.f32.partialorder %v4046_v8, 0.0  ;;  %v4065_v48 = vmul.f32 %v4063_v5, %v4046_v8  ;;  %vm4054_vm9 = vcmp.gt.f32.partialorder %v4045_v9, 0.0  ;;  %v4064_v44 = vmul.f32 %v4063_v5, %v4045_v9 }
 0x2c7   : > { %vm4056_vm15 = vcmp.gt.f32.partialorder %v4047_v11, 0.0  ;;  %v4066_v58 = vmul.f32 %v4063_v5, %v4047_v11  ;;  %vm4057_vm11 = vcmp.gt.f32.partialorder %v4048_v12, 0.0  ;;  %v4067_v63 = vmul.f32 %v4063_v5, %v4048_v12 }
 0x2c8   : > { %v4074_v19 = vsel %vm4055_vm7, %v4046_v8, %v4065_v48  ;;  %v4073_v20 = vsel %vm4054_vm9, %v4045_v9, %v4064_v44  ;;  %v4068_v22 = vmul.f32 %v4063_v5, %v4049_v14  ;;  %vm4058_vm1 = vcmp.gt.f32.partialorder %v4049_v14, 0.0 }
 0x2c9   : > { %v4089_v16 = vsel %vm8949_vm6, %v4074_v19, 0.0  ;;  %v4088_v21 = vsel %vm8937_vm13, %v4073_v20, 0.0  ;;  %v4075_v25 = vsel %vm4056_vm15, %v4047_v11, %v4066_v58  ;;  %v4076_v26 = vsel %vm4057_vm11, %v4048_v12, %v4067_v63  ;;  %v7989_v19 = vld [vmem:[%s9566_s3 + $0x8] sm:$0xff] }
 0x2ca   : > { %4108 = vrot.lane.b32.xlu1 %v4089_v16, %s8408_s9  ;;  %4106 = vrot.lane.b32.xlu0 %v4088_v21, %s8408_s9  ;;  %vm4059_vm7 = vcmp.gt.f32.partialorder %v4050_v15, 0.0  ;;  %v4069_v28 = vmul.f32 %v4063_v5, %v4050_v15  ;;  %vm4084_vm9 = vcmask 1048344   ;;  %v4090_v31 = vsel %vm8955_vm14, %v4075_v25, 0.0 }
 0x2cb   : > { %v4091_v32 = vsel %vm8964_vm10, %v4076_v26, 0.0  ;;  %v4077_v33 = vsel %vm4058_vm1, %v4049_v14, %v4068_v22  ;;  %v4070_v34 = vmul.f32 %v4063_v5, %v4051_v23  ;;  %4085 = vst.msk [vmem:[#allocation2 + $0x40] sm:$0xff] %vm4084_vm9, %v8398_v0  ;;  %v4071_v37 = vmul.f32 %v4063_v5, %v4052_v27 }
 0x2cc   : > { %v4078_v35 = vsel %vm4059_vm7, %v4050_v15, %v4069_v28  ;;  %v4053_v38 = vmul.f32 %v8372_v4, %v4042_v29  ;;  %vm4060_vm11 = vcmp.gt.f32.partialorder %v4051_v23, 0.0  ;;  %vm4061_vm15 = vcmp.gt.f32.partialorder %v4052_v27, 0.0 }
 0x2cd   : > { %v4092_v39 = vsel %vm8990_vm8, %v4077_v33, 0.0  ;;  %v4093_v40 = vsel %vm9008_vm4, %v4078_v35, 0.0  ;;  %v4079_v41 = vsel %vm4060_vm11, %v4051_v23, %v4070_v34  ;;  %v4080_v43 = vsel %vm4061_vm15, %v4052_v27, %v4071_v37 }
 0x2ce   : > { %4110 = vrot.lane.b32.xlu1 %v4090_v31, %s8408_s9  ;;  %4112 = vrot.lane.b32.xlu0 %v4091_v32, %s8408_s9  ;;  %v4072_v46 = vmul.f32 %v4063_v5, %v4053_v38  ;;  %vm4062_vm1 = vcmp.gt.f32.partialorder %v4053_v38, 0.0  ;;  %v4094_v47 = vsel %vm9016_vm3, %v4079_v41, 0.0  ;;  %v4095_v50 = vsel %vm9024_vm2, %v4080_v43, 0.0 }
 0x2cf   : > { %vm4086_vm7 = vcmask 310272   ;;  %vm4141_vm9 = vcmask 1047832   ;;  %vm4150_vm11 = vcmask 809984  }
 0x2d0   : > { %v4081_v51 = vsel %vm4062_vm1, %v4053_v38, %v4072_v46  ;;  %4087 = vst.msk [vmem:[#allocation2 + $0x48] sm:$0xff] %vm4086_vm7, %v8398_v0  ;;  %v4152_v38 = vld [vmem:[%s9566_s3] sm:$0xff] }
 0x2d1   : > { %v4096_v52 = vsel %vm9035_vm5, %v4081_v51, 0.0 }
 0x2d2   : > { %4114 = vrot.lane.b32.xlu1 %v4092_v39, %s8408_s9  ;;  %4116 = vrot.lane.b32.xlu0 %v4093_v40, %s8408_s9 }
 0x2d6   : > { %4118 = vrot.lane.b32.xlu1 %v4094_v47, %s8408_s9  ;;  %4120 = vrot.lane.b32.xlu0 %v4095_v50, %s8408_s9 }
 0x2d7   : > { %v9223_v14 = vld [vmem:[#allocation2 + $0x48] sm:$0xff] }
 0x2da   : > { %4122 = vrot.lane.b32.xlu1 %v4096_v52, %s8408_s9 }
 0x33c   : > { %v4109_v53 = vpop.permute.xlu1 %4108  ;;  %v4107_v54 = vpop.permute.xlu0 %4106 }
 0x33d   : > { %v9088_v55 = vsel %vm4082_vm12, %v4107_v54, %v4109_v53  ;;  %4142 = vst.msk [vmem:[#allocation2] sm:$0xff] %vm4141_vm9, %v4107_v54  ;;  %vm9619_vm9 = vmmov 0  }
 0x340   : > { %v4111_v56 = vpop.permute.xlu1 %4110  ;;  %v4113_v57 = vpop.permute.xlu0 %4112 }
 0x341   : > { %v9091_v59 = vsel %vm4082_vm12, %v4109_v53, %v4111_v56  ;;  %v9094_v60 = vsel %vm4082_vm12, %v4111_v56, %v4113_v57 }
 0x342   : > { %4177 = vrot.lane.b32.xlu1 %v9091_v59, %s8399_s25 }
 0x344   : > { %v4115_v61 = vpop.permute.xlu1 %4114  ;;  %v4117_v62 = vpop.permute.xlu0 %4116  ;;  %v9098_v2 = vld [vmem:[#allocation2] sm:$0xff] }
 0x345   : > { %v9101_v3 = vsel %vm4082_vm12, %v4113_v57, %v4115_v61  ;;  %v9104_v4 = vsel %vm4082_vm12, %v4115_v61, %v4117_v62  ;;  %4173 = vrot.lane.b32.xlu0 %v9098_v2, %s8399_s25  ;;  %v8000_v57 = vld [vmem:[%s9566_s3 + $0x10] sm:$0xff] }
 0x346   : > { %4179 = vrot.lane.b32.xlu1 %v9094_v60, %s8399_s25 }
 0x348   : > { %v4119_v5 = vpop.permute.xlu1 %4118  ;;  %v4121_v6 = vpop.permute.xlu0 %4120 }
 0x349   : > { %v9111_v7 = vsel %vm4082_vm12, %v4117_v62, %v4119_v5  ;;  %v9114_v8 = vsel %vm4082_vm12, %v4119_v5, %v4121_v6  ;;  %4175 = vrot.lane.b32.xlu0 %v9088_v55, %s8399_s25 }
 0x34a   : > { %4183 = vrot.lane.b32.xlu1 %v9104_v4, %s8399_s25 }
 0x34c   : > { %v4123_v9 = vpop.permute.xlu1 %4122 }
 0x34d   : > { %v4131_v11 = vsel %vm4082_vm12, %v4121_v6, %v4123_v9  ;;  %4181 = vrot.lane.b32.xlu0 %v9101_v3, %s8399_s25  ;;  %vm9615_vm12 = vcmask 64512  }
 0x34e   : > { %4151 = vst.msk [vmem:[#allocation2 + $0x40] sm:$0xff] %vm4150_vm11, %v4131_v11  ;;  %4187 = vrot.lane.b32.xlu1 %v9114_v8, %s8399_s25  ;;  %vm9616_vm15 = vmmov %vm9615_vm12 }
 0x34f   : > { %vm9617_vm1 = vmmov %vm9615_vm12 }
 0x350   : > { %vm9618_vm7 = vmmov %vm9617_vm1 }
 0x351   : > { %4185 = vrot.lane.b32.xlu0 %v9111_v7, %s8399_s25 }
 0x352   : > { %4924 = vrot.lane.b32.xlu1 %v9098_v2, %s8400_s26 }
 0x355   : > { %v9129_v12 = vld [vmem:[#allocation2 + $0x40] sm:$0xff] }
 0x356   : > { %4189 = vrot.lane.b32.xlu0 %v9129_v12, %s8399_s25  ;;  %4926 = vrot.lane.b32.xlu1 %v9088_v55, %s8400_s26 }
 0x35a   : > { %4928 = vrot.lane.b32.xlu0 %v9091_v59, %s8400_s26  ;;  %4932 = vrot.lane.b32.xlu1 %v9101_v3, %s8400_s26 }
 0x35e   : > { %4930 = vrot.lane.b32.xlu0 %v9094_v60, %s8400_s26  ;;  %4936 = vrot.lane.b32.xlu1 %v9111_v7, %s8400_s26 }
 0x362   : > { %4934 = vrot.lane.b32.xlu0 %v9104_v4, %s8400_s26  ;;  %4940 = vrot.lane.b32.xlu1 %v9129_v12, %s8400_s26 }
 0x366   : > { %4938 = vrot.lane.b32.xlu0 %v9114_v8, %s8400_s26  ;;  %5331 = vrot.lane.b32.xlu1 %v9091_v59, %s8401_s27 }
 0x36a   : > { %5327 = vrot.lane.b32.xlu0 %v9098_v2, %s8401_s27  ;;  %5333 = vrot.lane.b32.xlu1 %v9094_v60, %s8401_s27 }
 0x36e   : > { %5329 = vrot.lane.b32.xlu0 %v9088_v55, %s8401_s27  ;;  %5337 = vrot.lane.b32.xlu1 %v9104_v4, %s8401_s27 }
 0x372   : > { %5335 = vrot.lane.b32.xlu0 %v9101_v3, %s8401_s27  ;;  %5341 = vrot.lane.b32.xlu1 %v9114_v8, %s8401_s27 }
 0x376   : > { %5339 = vrot.lane.b32.xlu0 %v9111_v7, %s8401_s27  ;;  %5730 = vrot.lane.b32.xlu1 %v9098_v2, %s8402_s28 }
 0x37a   : > { %5343 = vrot.lane.b32.xlu0 %v9129_v12, %s8401_s27  ;;  %5732 = vrot.lane.b32.xlu1 %v9088_v55, %s8402_s28 }
 0x37e   : > { %5734 = vrot.lane.b32.xlu0 %v9091_v59, %s8402_s28  ;;  %5738 = vrot.lane.b32.xlu1 %v9101_v3, %s8402_s28 }
 0x382   : > { %5736 = vrot.lane.b32.xlu0 %v9094_v60, %s8402_s28  ;;  %5742 = vrot.lane.b32.xlu1 %v9111_v7, %s8402_s28 }
 0x386   : > { %5740 = vrot.lane.b32.xlu0 %v9104_v4, %s8402_s28  ;;  %5746 = vrot.lane.b32.xlu1 %v9129_v12, %s8402_s28 }
 0x38a   : > { %5744 = vrot.lane.b32.xlu0 %v9114_v8, %s8402_s28  ;;  %6137 = vrot.lane.b32.xlu1 %v9091_v59, %s8403_s29 }
 0x38e   : > { %6133 = vrot.lane.b32.xlu0 %v9098_v2, %s8403_s29  ;;  %6139 = vrot.lane.b32.xlu1 %v9094_v60, %s8403_s29 }
 0x392   : > { %6135 = vrot.lane.b32.xlu0 %v9088_v55, %s8403_s29  ;;  %6143 = vrot.lane.b32.xlu1 %v9104_v4, %s8403_s29 }
 0x396   : > { %6141 = vrot.lane.b32.xlu0 %v9101_v3, %s8403_s29  ;;  %6147 = vrot.lane.b32.xlu1 %v9114_v8, %s8403_s29 }
 0x39a   : > { %6145 = vrot.lane.b32.xlu0 %v9111_v7, %s8403_s29  ;;  %6556 = vrot.lane.b32.xlu1 %v9098_v2, %s8404_s30 }
 0x39e   : > { %6149 = vrot.lane.b32.xlu0 %v9129_v12, %s8403_s29  ;;  %6558 = vrot.lane.b32.xlu1 %v9088_v55, %s8404_s30 }
 0x3a2   : > { %6560 = vrot.lane.b32.xlu0 %v9091_v59, %s8404_s30  ;;  %6564 = vrot.lane.b32.xlu1 %v9101_v3, %s8404_s30 }
 0x3a6   : > { %6562 = vrot.lane.b32.xlu0 %v9094_v60, %s8404_s30  ;;  %6568 = vrot.lane.b32.xlu1 %v9111_v7, %s8404_s30 }
 0x3aa   : > { %6566 = vrot.lane.b32.xlu0 %v9104_v4, %s8404_s30  ;;  %6572 = vrot.lane.b32.xlu1 %v9129_v12, %s8404_s30 }
 0x3ae   : > { %6570 = vrot.lane.b32.xlu0 %v9114_v8, %s8404_s30  ;;  %6962 = vrot.lane.b32.xlu1 %v9098_v2, %s8405_s5 }
 0x3b2   : > { %6574 = vrot.lane.b32.xlu0 %v9223_v14, %s8404_s30  ;;  %6964 = vrot.lane.b32.xlu1 %v9088_v55, %s8405_s5 }
 0x3b4   : > { %v4178_v15 = vpop.permute.xlu1 %4177 }
 0x3b6   : > { %6966 = vrot.lane.b32.xlu0 %v9091_v59, %s8405_s5  ;;  %6970 = vrot.lane.b32.xlu1 %v9101_v3, %s8405_s5 }
 0x3b7   : > { %v4174_v18 = vpop.permute.xlu0 %4173 }
 0x3b8   : > { %v4180_v48 = vpop.permute.xlu1 %4179 }
 0x3b9   : > { %v4193_v22 = vsel %vm380_vm0, %v4178_v15, %v4180_v48 }
 0x3ba   : > { %6968 = vrot.lane.b32.xlu0 %v9094_v60, %s8405_s5  ;;  %6974 = vrot.lane.b32.xlu1 %v9111_v7, %s8405_s5 }
 0x3bb   : > { %v4176_v44 = vpop.permute.xlu0 %4175 }
 0x3bc   : > { %v4192_v58 = vsel %vm380_vm0, %v4176_v44, %v4178_v15  ;;  %v4191_v63 = vsel %vm380_vm0, %v4174_v18, %v4176_v44  ;;  %v4184_v20 = vpop.permute.xlu1 %4183  ;;  %v8006_v44 = vld [vmem:[%s9566_s3 + $0x18] sm:$0xff] }
 0x3bd   : > { %4211 = vmatprep.subr.mxu1 %v4192_v58 }
 0x3be   : > { %6972 = vrot.lane.b32.xlu0 %v9104_v4, %s8405_s5  ;;  %4212 = vmatpush1.msra.mxu1 %v4191_v63 }
 0x3bf   : > { %7990 = vmatmul.mubr.msk.f32.vlgmr.msra.gmra.mrb[0].mxu1 %vm9615_vm12, %v7989_v19  ;;  %v4182_v13 = vpop.permute.xlu0 %4181  ;;  %6978 = vrot.lane.b32.xlu1 %v9129_v12, %s8405_s5 }
 0x3c0   : > { %v4194_v16 = vsel %vm380_vm0, %v4180_v48, %v4182_v13  ;;  %4346 = vmatprep.mubr.f32.mxu1 %v8398_v0  ;;  %v4188_v21 = vpop.permute.xlu1 %4187  ;;  %v4195_v27 = vsel %vm380_vm0, %v4182_v13, %v4184_v20 }
 0x3c1   : > { %4282 = vmatprep.subr.mxu1 %v4194_v16 }
 0x3c2   : > { %6976 = vrot.lane.b32.xlu0 %v9114_v8, %s8405_s5  ;;  %4283 = vmatpush1.msra.mxu1 %v4193_v22 }
 0x3c3   : > { %7991 = vmatmul.mubr.msk.f32.vlgmr.msra.gmra.mrb[2].mxu1 %vm9616_vm15, %v7989_v19  ;;  %v4186_v23 = vpop.permute.xlu0 %4185  ;;  %7368 = vrot.lane.b32.xlu1 %v9098_v2, %s8406_s8 }
 0x3c4   : > { %v4196_v25 = vsel %vm380_vm0, %v4184_v20, %v4186_v23  ;;  %4417 = vmatprep.mubr.f32.mxu1 %v8398_v0  ;;  %v4925_v26 = vpop.permute.xlu1 %4924  ;;  %v4197_v32 = vsel %vm380_vm0, %v4186_v23, %v4188_v21 }
 0x3c5   : > { %4353 = vmatprep.subr.mxu1 %v4196_v25 }
 0x3c6   : > { %6980 = vrot.lane.b32.xlu0 %v9223_v14, %s8405_s5  ;;  %4354 = vmatpush1.msra.mxu1 %v4195_v27 }
 0x3c7   : > { %7992 = vmatmul.mubr.msk.f32.vlgmr.msra.gmra.mrb[4].mxu1 %vm9617_vm1, %v7989_v19  ;;  %7370 = vrot.lane.b32.xlu1 %v9088_v55, %s8406_s8 }
 0x3c8   : > { %v4190_v28 = vpop.permute.xlu0 %4189  ;;  %4488 = vmatprep.mubr.f32.mxu1 %v8398_v0  ;;  %v4927_v29 = vpop.permute.xlu1 %4926 }
 0x3c9   : > { %v4198_v31 = vsel %vm380_vm0, %v4188_v21, %v4190_v28  ;;  %vm9620_vm0 = vmmov %vm9617_vm1 }
 0x3ca   : > { %7372 = vrot.lane.b32.xlu0 %v9091_v59, %s8406_s8  ;;  %4424 = vmatprep.subr.mxu1 %v4198_v31  ;;  %vm9621_vm11 = vmmov %vm9620_vm0 }
 0x3cb   : > { %4425 = vmatpush1.msra.mxu1 %v4197_v32  ;;  %7376 = vrot.lane.b32.xlu1 %v9101_v3, %s8406_s8  ;;  %vm9622_vm12 = vmmov %vm9620_vm0 }
 0x3cc   : > { %7993 = vmatmul.mubr.msk.f32.vlgmr.msra.gmra.mrb[6].mxu1 %vm9618_vm7, %v7989_v19  ;;  %8126 = vmatprep.subr.mxu1 %v8398_v0  ;;  %v4929_v33 = vpop.permute.xlu0 %4928  ;;  %v4933_v34 = vpop.permute.xlu1 %4932  ;;  %vm9623_vm15 = vmmov %vm9620_vm0  ;;  %vm9625_vm7 = vcmask 1031168  }
 0x3cd   : > { %8127 = vmatpush3.msra.mxu1 %v4190_v28  ;;  %8128 = vmatprep.mubr.msk.f32.mxu1 %vm9619_vm9, %v8398_v0  ;;  %vm9624_vm1 = vmmov %vm9620_vm0  ;;  %v4943_v52 = vsel %vm9625_vm7, %v4927_v29, %v4929_v33 }
 0x3ce   : > { %7374 = vrot.lane.b32.xlu0 %v9094_v60, %s8406_s8  ;;  %4568 = vmatprep.subr.mxu1 %v9088_v55 }
 0x3cf   : > { %7380 = vrot.lane.b32.xlu1 %v9111_v7, %s8406_s8 }
 0x3d0   : > { %8129 = vmatmul.mubr.msk.f32.vlgmr.msra.gmra.mrb[8].mxu1 %vm9620_vm0, %v7989_v19  ;;  %v4931_v35 = vpop.permute.xlu0 %4930  ;;  %v4937_v37 = vpop.permute.xlu1 %4936  ;;  %vm9626_vm0 = vmmov %vm9625_vm7 }
 0x3d1   : > { %4569 = vmatpush1.msra.mxu1 %v9098_v2  ;;  %4632 = vmatprep.mubr.f32.mxu1 %v8398_v0  ;;  %v4942_v53 = vsel %vm9626_vm0, %v4925_v26, %v4927_v29  ;;  %vm9630_vm7 = vmmov %vm9626_vm0 }
 0x3d2   : > { %4639 = vmatprep.subr.mxu1 %v9094_v60  ;;  %7378 = vrot.lane.b32.xlu0 %v9104_v4, %s8406_s8 }
 0x3d3   : > { %7384 = vrot.lane.b32.xlu1 %v9129_v12, %s8406_s8 }
 0x3d4   : > { %7995 = vmatmul.mubr.msk.f32.vlgmr.msra.gmra.mrb[0].mxu1 %vm9621_vm11, %v4152_v38  ;;  %v4935_v39 = vpop.permute.xlu0 %4934  ;;  %v4941_v40 = vpop.permute.xlu1 %4940  ;;  %vm9627_vm11 = vmmov %vm9624_vm1 }
 0x3d5   : > { %4640 = vmatpush1.msra.mxu1 %v9091_v59  ;;  %4703 = vmatprep.mubr.f32.mxu1 %v8398_v0  ;;  %v4947_v62 = vsel %vm9630_vm7, %v4935_v39, %v4937_v37  ;;  %v4946_v2 = vsel %vm9626_vm0, %v4933_v34, %v4935_v39  ;;  %vm9634_vm7 = vmmov %vm9624_vm1 }
 0x3d6   : > { %4710 = vmatprep.subr.mxu1 %v9104_v4  ;;  %7382 = vrot.lane.b32.xlu0 %v9114_v8, %s8406_s8 }
 0x3d8   : > { %7996 = vmatmul.mubr.msk.f32.vlgmr.msra.gmra.mrb[2].mxu1 %vm9622_vm12, %v4152_v38  ;;  %v4939_v41 = vpop.permute.xlu0 %4938  ;;  %v9297_v43 = vpop.permute.xlu1 %5331  ;;  %vm9628_vm12 = vmmov %vm9626_vm0 }
 0x3d9   : > { %4711 = vmatpush1.msra.mxu1 %v9101_v3  ;;  %4774 = vmatprep.mubr.f32.mxu1 %v8398_v0  ;;  %v4945_v56 = vsel %vm9628_vm12, %v4931_v35, %v4933_v34  ;;  %vm9632_vm12 = vmmov %vm9626_vm0  ;;  %v8012_v34 = vld [vmem:[%s9566_s3 + $0x20] sm:$0xff] }
 0x3da   : > { %4781 = vmatprep.subr.mxu1 %v9114_v8  ;;  %7386 = vrot.lane.b32.xlu0 %v9223_v14, %s8406_s8  ;;  %v4949_v5 = vsel %vm9632_vm12, %v4939_v41, %v4941_v40  ;;  %vm9637_vm12 = vmmov %vm9624_vm1 }
 0x3dc   : > { %7997 = vmatmul.mubr.msk.f32.vlgmr.msra.gmra.mrb[4].mxu1 %vm9623_vm15, %v4152_v38  ;;  %v5328_v46 = vpop.permute.xlu0 %5327  ;;  %v5334_v47 = vpop.permute.xlu1 %5333  ;;  %vm9629_vm15 = vmmov %vm9626_vm0 }
 0x3dd   : > { %4782 = vmatpush1.msra.mxu1 %v9111_v7  ;;  %4845 = vmatprep.mubr.f32.mxu1 %v8398_v0  ;;  %v4944_v59 = vsel %vm9629_vm15, %v4929_v33, %v4931_v35  ;;  %vm9633_vm15 = vmmov %vm9626_vm0  ;;  %vm9635_vm0 = vcmask 769024  }
 0x3de   : > { %8131 = vmatprep.subr.mxu1 %v8398_v0  ;;  %v4948_v6 = vsel %vm9633_vm15, %v4937_v37, %v4939_v41  ;;  %vm9638_vm15 = vmmov %vm9635_vm0 }
 0x3e0   : > { %7998 = vmatmul.mubr.msk.f32.vlgmr.msra.gmra.mrb[6].mxu1 %vm9624_vm1, %v4152_v38  ;;  %v5330_v50 = vpop.permute.xlu0 %5329  ;;  %v5338_v51 = vpop.permute.xlu1 %5337 }
 0x3e1   : > { %8132 = vmatpush3.msra.mxu1 %v9129_v12  ;;  %8133 = vmatprep.mubr.msk.f32.mxu1 %vm9619_vm9, %v8398_v0  ;;  %v5346_v12 = vsel %vm9635_vm0, %v5330_v50, %v9297_v43 }
 0x3e2   : > { %4962 = vmatprep.subr.mxu1 %v4943_v52 }
 0x3e4   : > { %8134 = vmatmul.mubr.msk.f32.vlgmr.msra.gmra.mrb[8].mxu1 %vm9627_vm11, %v4152_v38  ;;  %v5336_v54 = vpop.permute.xlu0 %5335  ;;  %v5342_v55 = vpop.permute.xlu1 %5341  ;;  %vm9631_vm11 = vmmov %vm9624_vm1 }
 0x3e5   : > { %4963 = vmatpush1.msra.mxu1 %v4942_v53  ;;  %5026 = vmatprep.mubr.f32.mxu1 %v8398_v0  ;;  %v5348_v48 = vsel %vm9638_vm15, %v5334_v47, %v5336_v54  ;;  %vm9642_vm15 = vmmov %vm9635_vm0 }
 0x3e6   : > { %5033 = vmatprep.subr.mxu1 %v4945_v56  ;;  %v8018_v56 = vld [vmem:[%s9566_s3 + $0x28] sm:$0xff] }
 0x3e8   : > { %8001 = vmatmul.mubr.msk.f32.vlgmr.msra.gmra.mrb[0].mxu1 %vm9624_vm1, %v8000_v57  ;;  %v5340_v60 = vpop.permute.xlu0 %5339  ;;  %v9322_v61 = vpop.permute.xlu1 %5730 }
 0x3e9   : > { %5034 = vmatpush1.msra.mxu1 %v4944_v59  ;;  %5097 = vmatprep.mubr.f32.mxu1 %v8398_v0  ;;  %v5350_v20 = vsel %vm9635_vm0, %v5338_v51, %v5340_v60 }
 0x3ea   : > { %5104 = vmatprep.subr.mxu1 %v4947_v62 }
 0x3ec   : > { %8002 = vmatmul.mubr.msk.f32.vlgmr.msra.gmra.mrb[2].mxu1 %vm9631_vm11, %v8000_v57  ;;  %v5344_v3 = vpop.permute.xlu0 %5343  ;;  %v5733_v4 = vpop.permute.xlu1 %5732  ;;  %vm9636_vm11 = vmmov %vm9635_vm0 }
 0x3ed   : > { %5105 = vmatpush1.msra.mxu1 %v4946_v2  ;;  %5168 = vmatprep.mubr.f32.mxu1 %v8398_v0  ;;  %v5345_v14 = vsel %vm9636_vm11, %v5328_v46, %v5330_v50  ;;  %vm9640_vm11 = vmmov %vm9635_vm0  ;;  %v5352_v22 = vsel %vm9642_vm15, %v5342_v55, %v5344_v3 }
 0x3ee   : > { %5175 = vmatprep.subr.mxu1 %v4949_v5  ;;  %v5349_v13 = vsel %vm9640_vm11, %v5336_v54, %v5338_v51  ;;  %vm9645_vm11 = vcmask 760832  }
 0x3f0   : > { %8003 = vmatmul.mubr.msk.f32.vlgmr.msra.gmra.mrb[4].mxu1 %vm9624_vm1, %v8000_v57  ;;  %v5735_v7 = vpop.permute.xlu0 %5734  ;;  %v9332_v8 = vpop.permute.xlu1 %5738  ;;  %vm9639_vm1 = vmmov %vm9635_vm0 }
 0x3f1   : > { %5176 = vmatpush1.msra.mxu1 %v4948_v6  ;;  %5239 = vmatprep.mubr.f32.mxu1 %v8398_v0  ;;  %v5347_v58 = vsel %vm9639_vm1, %v9297_v43, %v5334_v47  ;;  %vm9643_vm1 = vmmov %vm9635_vm0  ;;  %v5749_v28 = vsel %vm9645_vm11, %v5733_v4, %v5735_v7 }
 0x3f2   : > { %8136 = vmatprep.subr.mxu1 %v8398_v0  ;;  %v5351_v23 = vsel %vm9643_vm1, %v5340_v60, %v5342_v55  ;;  %vm9644_vm0 = vmmov %vm9634_vm7 }
 0x3f3   : > { %vm9647_vm15 = vmmov %vm9644_vm0 }
 0x3f4   : > { %8004 = vmatmul.mubr.msk.f32.vlgmr.msra.gmra.mrb[6].mxu1 %vm9634_vm7, %v8000_v57  ;;  %v5737_v9 = vpop.permute.xlu0 %5736  ;;  %v9337_v11 = vpop.permute.xlu1 %5742  ;;  %vm9648_vm1 = vmmov %vm9645_vm11 }
 0x3f5   : > { %8137 = vmatpush3.msra.mxu1 %v4941_v40  ;;  %8138 = vmatprep.mubr.msk.f32.mxu1 %vm9619_vm9, %v8398_v0  ;;  %v5751_v33 = vsel %vm9648_vm1, %v5737_v9, %v9332_v8 }
 0x3f6   : > { %5365 = vmatprep.subr.mxu1 %v5346_v12 }
 0x3f8   : > { %8139 = vmatmul.mubr.msk.f32.vlgmr.msra.gmra.mrb[8].mxu1 %vm9637_vm12, %v8000_v57  ;;  %v5741_v15 = vpop.permute.xlu0 %5740  ;;  %v9345_v18 = vpop.permute.xlu1 %5746  ;;  %vm9641_vm12 = vmmov %vm9634_vm7 }
 0x3f9   : > { %5366 = vmatpush1.msra.mxu1 %v5345_v14  ;;  %5429 = vmatprep.mubr.f32.mxu1 %v8398_v0  ;;  %v8024_v14 = vld [vmem:[%s9566_s3 + $0x30] sm:$0xff] }
 0x3fa   : > { %5436 = vmatprep.subr.mxu1 %v5348_v48 }
 0x3fc   : > { %8007 = vmatmul.mubr.msk.f32.vlgmr.msra.gmra.mrb[0].mxu1 %vm9634_vm7, %v8006_v44  ;;  %v5745_v63 = vpop.permute.xlu0 %5744  ;;  %v9355_v19 = vpop.permute.xlu1 %6137 }
 0x3fd   : > { %5437 = vmatpush1.msra.mxu1 %v5347_v58  ;;  %5500 = vmatprep.mubr.f32.mxu1 %v8398_v0  ;;  %v5755_v43 = vsel %vm9648_vm1, %v5745_v63, %v9345_v18 }
 0x3fe   : > { %5507 = vmatprep.subr.mxu1 %v5350_v20 }
 0x400   : > { %8008 = vmatmul.mubr.msk.f32.vlgmr.msra.gmra.mrb[2].mxu1 %vm9641_vm12, %v8006_v44  ;;  %v6134_v16 = vpop.permute.xlu0 %6133  ;;  %v9361_v21 = vpop.permute.xlu1 %6139  ;;  %vm9646_vm12 = vmmov %vm9645_vm11 }
 0x401   : > { %5508 = vmatpush1.msra.mxu1 %v5349_v13  ;;  %5571 = vmatprep.mubr.f32.mxu1 %v8398_v0  ;;  %v5748_v31 = vsel %vm9646_vm12, %v9322_v61, %v5733_v4  ;;  %vm9650_vm11 = vmmov %vm9648_vm1 }
 0x402   : > { %5578 = vmatprep.subr.mxu1 %v5352_v22  ;;  %v5753_v39 = vsel %vm9650_vm11, %v5741_v15, %v9337_v11  ;;  %vm9651_vm12 = vmmov %vm9648_vm1 }
 0x403   : > { %v5752_v40 = vsel %vm9651_vm12, %v9332_v8, %v5741_v15  ;;  %vm9654_vm11 = vmmov %vm9644_vm0  ;;  %vm9655_vm12 = vcmask 752640  }
 0x404   : > { %8009 = vmatmul.mubr.msk.f32.vlgmr.msra.gmra.mrb[4].mxu1 %vm9634_vm7, %v8006_v44  ;;  %v6136_v25 = vpop.permute.xlu0 %6135  ;;  %v9367_v26 = vpop.permute.xlu1 %6143  ;;  %vm9649_vm7 = vmmov %vm9648_vm1 }
 0x405   : > { %5579 = vmatpush1.msra.mxu1 %v5351_v23  ;;  %5642 = vmatprep.mubr.f32.mxu1 %v8398_v0  ;;  %v5750_v35 = vsel %vm9649_vm7, %v5735_v7, %v5737_v9  ;;  %vm9653_vm7 = vmmov %vm9648_vm1  ;;  %v6152_v52 = vsel %vm9655_vm12, %v6136_v25, %v9355_v19 }
 0x406   : > { %8141 = vmatprep.subr.mxu1 %v8398_v0  ;;  %v5754_v47 = vsel %vm9653_vm7, %v9337_v11, %v5745_v63  ;;  %vm9657_vm1 = vmmov %vm9644_vm0 }
 0x407   : > { %vm9658_vm7 = vmmov %vm9655_vm12 }
 0x408   : > { %8010 = vmatmul.mubr.msk.f32.vlgmr.msra.gmra.mrb[6].mxu1 %vm9644_vm0, %v8006_v44  ;;  %v6142_v27 = vpop.permute.xlu0 %6141  ;;  %v6148_v29 = vpop.permute.xlu1 %6147 }
 0x409   : > { %8142 = vmatpush3.msra.mxu1 %v5344_v3  ;;  %8143 = vmatprep.mubr.msk.f32.mxu1 %vm9619_vm9, %v8398_v0  ;;  %v6154_v55 = vsel %vm9658_vm7, %v9361_v21, %v6142_v27 }
 0x40a   : > { %5768 = vmatprep.subr.mxu1 %v5749_v28 }
 0x40c   : > { %8144 = vmatmul.mubr.msk.f32.vlgmr.msra.gmra.mrb[8].mxu1 %vm9647_vm15, %v8006_v44  ;;  %v6146_v32 = vpop.permute.xlu0 %6145  ;;  %v6557_v38 = vpop.permute.xlu1 %6556  ;;  %vm9652_vm15 = vmmov %vm9644_vm0 }
 0x40d   : > { %5769 = vmatpush1.msra.mxu1 %v5748_v31  ;;  %5832 = vmatprep.mubr.f32.mxu1 %v8398_v0 }
 0x40e   : > { %5839 = vmatprep.subr.mxu1 %v5751_v33 }
 0x410   : > { %8013 = vmatmul.mubr.msk.f32.vlgmr.msra.gmra.mrb[0].mxu1 %vm9644_vm0, %v8012_v34  ;;  %v6150_v37 = vpop.permute.xlu0 %6149  ;;  %v6559_v46 = vpop.permute.xlu1 %6558 }
 0x411   : > { %5840 = vmatpush1.msra.mxu1 %v5750_v35  ;;  %5903 = vmatprep.mubr.f32.mxu1 %v8398_v0 }
 0x412   : > { %5910 = vmatprep.subr.mxu1 %v5753_v39 }
 0x414   : > { %8014 = vmatmul.mubr.msk.f32.vlgmr.msra.gmra.mrb[2].mxu1 %vm9652_vm15, %v8012_v34  ;;  %v9392_v41 = vpop.permute.xlu0 %6560  ;;  %v6565_v51 = vpop.permute.xlu1 %6564  ;;  %vm9656_vm15 = vmmov %vm9655_vm12 }
 0x415   : > { %5911 = vmatpush1.msra.mxu1 %v5752_v40  ;;  %5974 = vmatprep.mubr.f32.mxu1 %v8398_v0  ;;  %v6151_v53 = vsel %vm9656_vm15, %v6134_v16, %v6136_v25 }
 0x416   : > { %5981 = vmatprep.subr.mxu1 %v5755_v43 }
 0x418   : > { %8015 = vmatmul.mubr.msk.f32.vlgmr.msra.gmra.mrb[4].mxu1 %vm9644_vm0, %v8012_v34  ;;  %v6563_v50 = vpop.permute.xlu0 %6562  ;;  %v6569_v57 = vpop.permute.xlu1 %6568  ;;  %vm9659_vm0 = vmmov %vm9658_vm7 }
 0x419   : > { %5982 = vmatpush1.msra.mxu1 %v5754_v47  ;;  %6045 = vmatprep.mubr.f32.mxu1 %v8398_v0  ;;  %v6153_v59 = vsel %vm9659_vm0, %v9355_v19, %v9361_v21  ;;  %vm9661_vm12 = vmmov %vm9659_vm0  ;;  %v6157_v4 = vsel %vm9659_vm0, %v6146_v32, %v6148_v29 }
 0x41a   : > { %8146 = vmatprep.subr.mxu1 %v8398_v0  ;;  %v6156_v60 = vsel %vm9661_vm12, %v9367_v26, %v6146_v32  ;;  %vm9662_vm15 = vmmov %vm9659_vm0 }
 0x41b   : > { %v6155_v62 = vsel %vm9662_vm15, %v6142_v27, %v9367_v26  ;;  %vm9663_vm7 = vmmov %vm9659_vm0  ;;  %vm9666_vm15 = vcmask 490496   ;;  %v8030_v27 = vld [vmem:[%s9566_s3 + $0x38] sm:$0xff] }
 0x41c   : > { %8016 = vmatmul.mubr.msk.f32.vlgmr.msra.gmra.mrb[6].mxu1 %vm9654_vm11, %v8012_v34  ;;  %v6567_v54 = vpop.permute.xlu0 %6566  ;;  %vm9660_vm11 = vmmov %vm9657_vm1  ;;  %v6573_v2 = vpop.permute.xlu1 %6572  ;;  %v6158_v3 = vsel %vm9663_vm7, %v6148_v29, %v6150_v37  ;;  %v6577_v7 = vsel %vm9666_vm15, %v6559_v46, %v9392_v41 }
 0x41d   : > { %8147 = vmatpush3.msra.mxu1 %v9345_v18  ;;  %8148 = vmatprep.mubr.msk.f32.mxu1 %vm9619_vm9, %v8398_v0  ;;  %vm9665_vm12 = vmmov %vm9657_vm1 }
 0x41e   : > { %6171 = vmatprep.subr.mxu1 %v6152_v52 }
 0x420   : > { %8149 = vmatmul.mubr.msk.f32.vlgmr.msra.gmra.mrb[8].mxu1 %vm9657_vm1, %v8012_v34  ;;  %v6571_v61 = vpop.permute.xlu0 %6570  ;;  %v6963_v6 = vpop.permute.xlu1 %6962 }
 0x421   : > { %6172 = vmatpush1.msra.mxu1 %v6151_v53  ;;  %6235 = vmatprep.mubr.f32.mxu1 %v8398_v0 }
 0x422   : > { %6242 = vmatprep.subr.mxu1 %v6154_v55 }
 0x424   : > { %8019 = vmatmul.mubr.msk.f32.vlgmr.msra.gmra.mrb[0].mxu1 %vm9660_vm11, %v8018_v56  ;;  %v6575_v5 = vpop.permute.xlu0 %6574  ;;  %vm9664_vm11 = vmmov %vm9657_vm1  ;;  %v6965_v11 = vpop.permute.xlu1 %6964 }
 0x425   : > { %6243 = vmatpush1.msra.mxu1 %v6153_v59  ;;  %6306 = vmatprep.mubr.f32.mxu1 %v8398_v0  ;;  %vm9668_vm7 = vmmov %vm9664_vm11 }
 0x426   : > { %6313 = vmatprep.subr.mxu1 %v6156_v60 }
 0x428   : > { %8020 = vmatmul.mubr.msk.f32.vlgmr.msra.gmra.mrb[2].mxu1 %vm9657_vm1, %v8018_v56  ;;  %v6967_v8 = vpop.permute.xlu0 %6966  ;;  %vm9667_vm1 = vmmov %vm9666_vm15  ;;  %v6971_v44 = vpop.permute.xlu1 %6970 }
 0x429   : > { %6314 = vmatpush1.msra.mxu1 %v6155_v62  ;;  %6377 = vmatprep.mubr.f32.mxu1 %v8398_v0  ;;  %v6576_v9 = vsel %vm9667_vm1, %v6557_v38, %v6559_v46  ;;  %vm9669_vm0 = vmmov %vm9667_vm1 }
 0x42a   : > { %6384 = vmatprep.subr.mxu1 %v6158_v3  ;;  %v6579_v12 = vsel %vm9669_vm0, %v6563_v50, %v6565_v51  ;;  %vm9672_vm15 = vmmov %vm9669_vm0  ;;  %v6583_v63 = vsel %vm9669_vm0, %v6571_v61, %v6573_v2 }
 0x42b   : > { %v6581_v48 = vsel %vm9672_vm15, %v6567_v54, %v6569_v57  ;;  %vm9673_vm1 = vmmov %vm9669_vm0 }
 0x42c   : > { %8021 = vmatmul.mubr.msk.f32.vlgmr.msra.gmra.mrb[4].mxu1 %vm9664_vm11, %v8018_v56  ;;  %vm9670_vm11 = vmmov %vm9669_vm0  ;;  %v6969_v18 = vpop.permute.xlu0 %6968  ;;  %v6580_v58 = vsel %vm9673_vm1, %v6565_v51, %v6567_v54  ;;  %v6975_v13 = vpop.permute.xlu1 %6974  ;;  %v8036_v51 = vld [vmem:[%s9566_s3 + $0x40] sm:$0xff] }
 0x42d   : > { %6385 = vmatpush1.msra.mxu1 %v6157_v4  ;;  %6448 = vmatprep.mubr.f32.mxu1 %v8398_v0  ;;  %v6578_v15 = vsel %vm9670_vm11, %v9392_v41, %v6563_v50  ;;  %vm9674_vm11 = vmmov %vm9669_vm0 }
 0x42e   : > { %8151 = vmatprep.subr.mxu1 %v8398_v0  ;;  %v6582_v20 = vsel %vm9674_vm11, %v6569_v57, %v6571_v61  ;;  %vm9676_vm15 = vmmov %vm9669_vm0 }
 0x42f   : > { %v6584_v16 = vsel %vm9676_vm15, %v6573_v2, %v6575_v5  ;;  %vm9677_vm1 = vmmov %vm9668_vm7 }
 0x430   : > { %8022 = vmatmul.mubr.msk.f32.vlgmr.msra.gmra.mrb[6].mxu1 %vm9665_vm12, %v8018_v56  ;;  %vm9671_vm12 = vmmov %vm9668_vm7  ;;  %v6973_v19 = vpop.permute.xlu0 %6972 }
 0x431   : > { %8152 = vmatpush3.msra.mxu1 %v6150_v37  ;;  %8153 = vmatprep.mubr.msk.f32.mxu1 %vm9619_vm9, %v8398_v0  ;;  %v6979_v23 = vpop.permute.xlu1 %6978  ;;  %vm9680_vm11 = vmmov %vm9677_vm1 }
 0x432   : > { %6597 = vmatprep.subr.mxu1 %v6577_v7 }
 0x434   : > { %8154 = vmatmul.mubr.msk.f32.vlgmr.msra.gmra.mrb[8].mxu1 %vm9668_vm7, %v8018_v56  ;;  %v6977_v21 = vpop.permute.xlu0 %6976 }
 0x435   : > { %6598 = vmatpush1.msra.mxu1 %v6576_v9  ;;  %6661 = vmatprep.mubr.f32.mxu1 %v8398_v0  ;;  %v7369_v31 = vpop.permute.xlu1 %7368 }
 0x436   : > { %6668 = vmatprep.subr.mxu1 %v6579_v12 }
 0x438   : > { %8025 = vmatmul.mubr.msk.f32.vlgmr.msra.gmra.mrb[0].mxu1 %vm9671_vm12, %v8024_v14  ;;  %vm9675_vm12 = vmmov %vm9668_vm7  ;;  %v6981_v28 = vpop.permute.xlu0 %6980 }
 0x439   : > { %6669 = vmatpush1.msra.mxu1 %v6578_v15  ;;  %6732 = vmatprep.mubr.f32.mxu1 %v8398_v0  ;;  %v7371_v37 = vpop.permute.xlu1 %7370 }
 0x43a   : > { %6739 = vmatprep.subr.mxu1 %v6581_v48 }
 0x43c   : > { %8026 = vmatmul.mubr.msk.f32.vlgmr.msra.gmra.mrb[2].mxu1 %vm9668_vm7, %v8024_v14  ;;  %vm9678_vm7 = vcmask 482304   ;;  %v7373_v34 = vpop.permute.xlu0 %7372 }
 0x43d   : > { %6740 = vmatpush1.msra.mxu1 %v6580_v58  ;;  %6803 = vmatprep.mubr.f32.mxu1 %v8398_v0  ;;  %v6983_v22 = vsel %vm9678_vm7, %v6965_v11, %v6967_v8  ;;  %vm9679_vm0 = vmmov %vm9678_vm7  ;;  %v7377_v41 = vpop.permute.xlu1 %7376 }
 0x43e   : > { %6810 = vmatprep.subr.mxu1 %v6583_v63  ;;  %v6982_v25 = vsel %vm9679_vm0, %v6963_v6, %v6965_v11  ;;  %vm9682_vm15 = vmmov %vm9679_vm0  ;;  %v6986_v33 = vsel %vm9679_vm0, %v6971_v44, %v6973_v19 }
 0x43f   : > { %v6984_v29 = vsel %vm9682_vm15, %v6967_v8, %v6969_v18  ;;  %vm9683_vm7 = vmmov %vm9679_vm0 }
 0x440   : > { %8027 = vmatmul.mubr.msk.f32.vlgmr.msra.gmra.mrb[4].mxu1 %vm9675_vm12, %v8024_v14  ;;  %vm9681_vm12 = vmmov %vm9679_vm0  ;;  %v6987_v32 = vsel %vm9683_vm7, %v6973_v19, %v6975_v13  ;;  %v7375_v39 = vpop.permute.xlu0 %7374 }
 0x441   : > { %6811 = vmatpush1.msra.mxu1 %v6582_v20  ;;  %6874 = vmatprep.mubr.f32.mxu1 %v8398_v0  ;;  %v6985_v26 = vsel %vm9681_vm12, %v6969_v18, %v6971_v44  ;;  %vm9685_vm12 = vmmov %vm9679_vm0  ;;  %v7381_v52 = vpop.permute.xlu1 %7380 }
 0x442   : > { %8156 = vmatprep.subr.mxu1 %v8398_v0  ;;  %v6989_v35 = vsel %vm9685_vm12, %v6977_v21, %v6979_v23  ;;  %vm9686_vm15 = vmmov %vm9679_vm0 }
 0x443   : > { %v6988_v38 = vsel %vm9686_vm15, %v6975_v13, %v6977_v21  ;;  %vm9687_vm7 = vmmov %vm9679_vm0 }
 0x444   : > { %8028 = vmatmul.mubr.msk.f32.vlgmr.msra.gmra.mrb[6].mxu1 %vm9677_vm1, %v8024_v14  ;;  %v6990_v40 = vsel %vm9687_vm7, %v6979_v23, %v6981_v28  ;;  %vm9688_vm0 = vmmov %vm9677_vm1  ;;  %v7379_v47 = vpop.permute.xlu0 %7378 }
 0x445   : > { %8157 = vmatpush3.msra.mxu1 %v6584_v16  ;;  %8158 = vmatprep.mubr.msk.f32.mxu1 %vm9619_vm9, %v8398_v0  ;;  %vm9691_vm15 = vmmov %vm9688_vm0  ;;  %v7385_v57 = vpop.permute.xlu1 %7384 }
 0x446   : > { %7003 = vmatprep.subr.mxu1 %v6983_v22 }
 0x448   : > { %8159 = vmatmul.mubr.msk.f32.vlgmr.msra.gmra.mrb[8].mxu1 %vm9680_vm11, %v8024_v14  ;;  %vm9684_vm11 = vmmov %vm9677_vm1  ;;  %v7383_v55 = vpop.permute.xlu0 %7382 }
 0x449   : > { %7004 = vmatpush1.msra.mxu1 %v6982_v25  ;;  %7067 = vmatprep.mubr.f32.mxu1 %v8398_v0 }
 0x44a   : > { %7074 = vmatprep.subr.mxu1 %v6985_v26 }
 0x44c   : > { %8031 = vmatmul.mubr.msk.f32.vlgmr.msra.gmra.mrb[0].mxu1 %vm9677_vm1, %v8030_v27  ;;  %v7387_v61 = vpop.permute.xlu0 %7386 }
 0x44d   : > { %7075 = vmatpush1.msra.mxu1 %v6984_v29  ;;  %7138 = vmatprep.mubr.f32.mxu1 %v8398_v0 }
 0x44e   : > { %7145 = vmatprep.subr.mxu1 %v6987_v32 }
 0x450   : > { %8032 = vmatmul.mubr.msk.f32.vlgmr.msra.gmra.mrb[2].mxu1 %vm9684_vm11, %v8030_v27  ;;  %vm9689_vm11 = vcmask 474112  }
 0x451   : > { %7146 = vmatpush1.msra.mxu1 %v6986_v33  ;;  %7209 = vmatprep.mubr.f32.mxu1 %v8398_v0  ;;  %v7389_v43 = vsel %vm9689_vm11, %v7371_v37, %v7373_v34  ;;  %vm9690_vm12 = vmmov %vm9689_vm11 }
 0x452   : > { %7216 = vmatprep.subr.mxu1 %v6989_v35  ;;  %v7388_v46 = vsel %vm9690_vm12, %v7369_v31, %v7371_v37 }
 0x454   : > { %8033 = vmatmul.mubr.msk.f32.vlgmr.msra.gmra.mrb[4].mxu1 %vm9677_vm1, %v8030_v27  ;;  %vm9692_vm1 = vmmov %vm9689_vm11 }
 0x455   : > { %7217 = vmatpush1.msra.mxu1 %v6988_v38  ;;  %7280 = vmatprep.mubr.f32.mxu1 %v8398_v0  ;;  %v7391_v50 = vsel %vm9692_vm1, %v7375_v39, %v7377_v41  ;;  %vm9693_vm7 = vmmov %vm9692_vm1  ;;  %v7395_v59 = vsel %vm9692_vm1, %v7383_v55, %v7385_v57 }
 0x456   : > { %8161 = vmatprep.subr.mxu1 %v8398_v0  ;;  %v7390_v53 = vsel %vm9693_vm7, %v7373_v34, %v7375_v39  ;;  %vm9694_vm11 = vmmov %vm9692_vm1 }
 0x457   : > { %v7393_v54 = vsel %vm9694_vm11, %v7379_v47, %v7381_v52  ;;  %vm9695_vm12 = vmmov %vm9692_vm1 }
 0x458   : > { %8034 = vmatmul.mubr.msk.f32.vlgmr.msra.gmra.mrb[6].mxu1 %vm9688_vm0, %v8030_v27  ;;  %v7392_v56 = vsel %vm9695_vm12, %v7377_v41, %v7379_v47  ;;  %vm9697_vm7 = vmmov %vm9692_vm1 }
 0x459   : > { %8162 = vmatpush3.msra.mxu1 %v6990_v40  ;;  %8163 = vmatprep.mubr.msk.f32.mxu1 %vm9619_vm9, %v8398_v0  ;;  %v7394_v60 = vsel %vm9697_vm7, %v7381_v52, %v7383_v55  ;;  %vm9698_vm11 = vmmov %vm9692_vm1  ;;  %v7846_v52 = vstv %s8042_s21 }
 0x45a   : > { %7409 = vmatprep.subr.mxu1 %v7389_v43  ;;  %v7396_v62 = vsel %vm9698_vm11, %v7385_v57, %v7387_v61  ;;  %vm9699_vm12 = vmmov %vm9688_vm0 }
 0x45c   : > { %8164 = vmatmul.mubr.msk.f32.vlgmr.msra.gmra.mrb[8].mxu1 %vm9691_vm15, %v8030_v27  ;;  %vm9696_vm15 = vmmov %vm9688_vm0 }
 0x45d   : > { %7410 = vmatpush1.msra.mxu1 %v7388_v46  ;;  %7473 = vmatprep.mubr.f32.mxu1 %v8398_v0 }
 0x45e   : > { %7480 = vmatprep.subr.mxu1 %v7391_v50 }
 0x460   : > { %8037 = vmatmul.mubr.msk.f32.vlgmr.msra.gmra.mrb[0].mxu1 %vm9688_vm0, %v8036_v51 }
 0x461   : > { %7481 = vmatpush1.msra.mxu1 %v7390_v53  ;;  %7544 = vmatprep.mubr.f32.mxu1 %v8398_v0 }
 0x462   : > { %7551 = vmatprep.subr.mxu1 %v7393_v54 }
 0x464   : > { %8038 = vmatmul.mubr.msk.f32.vlgmr.msra.gmra.mrb[2].mxu1 %vm9696_vm15, %v8036_v51  ;;  %vm9700_vm15 = vmmov %vm9688_vm0 }
 0x465   : > { %7552 = vmatpush1.msra.mxu1 %v7392_v56  ;;  %7615 = vmatprep.mubr.f32.mxu1 %v8398_v0 }
 0x466   : > { %7622 = vmatprep.subr.mxu1 %v7395_v59 }
 0x468   : > { %8039 = vmatmul.mubr.msk.f32.vlgmr.msra.gmra.mrb[4].mxu1 %vm9688_vm0, %v8036_v51 }
 0x469   : > { %7623 = vmatpush1.msra.mxu1 %v7394_v60  ;;  %7686 = vmatprep.mubr.f32.mxu1 %v8398_v0 }
 0x46a   : > { %8166 = vmatprep.subr.mxu1 %v8398_v0 }
 0x46c   : > { %8040 = vmatmul.mubr.msk.f32.vlgmr.msra.gmra.mrb[6].mxu1 %vm9699_vm12, %v8036_v51 }
 0x46d   : > { %8167 = vmatpush3.msra.mxu1 %v7396_v62  ;;  %8168 = vmatprep.mubr.msk.f32.mxu1 %vm9619_vm9, %v8398_v0 }
 0x470   : > { %8169 = vmatmul.mubr.msk.f32.vlgmr.msra.gmra.mrb[8].mxu1 %vm9700_vm15, %v8036_v51 }
 0x533   : > { %v9510_v2 = vpop.f32.mrb[0].mxu1 }
 0x534   : > { %v7773_v3 = vsel %vm8937_vm13, %v9510_v2, 0.0  ;;  %v9515_v4 = vpop.f32.mrb[1].mxu1  ;;  %vm9701_vm13 = vcmask 523264  }
 0x535   : > { %v7793_v5 = vmul.f32 %v7773_v3, %v7773_v3  ;;  %v7774_v6 = vsel %vm8949_vm6, %v9515_v4, 0.0  ;;  %vm9702_vm6 = vmmov %vm9701_vm13 }
 0x536   : > { %v7782_v7 = vadd.f32 %v7774_v6, %v7773_v3  ;;  %v7794_v8 = vmul.f32 %v7774_v6, %v7774_v6  ;;  %vm9703_vm7 = vmmov %vm9702_vm6 }
 0x537   : > { %v9520_v9 = vpop.f32.mrb[2].mxu1 }
 0x538   : > { %v7802_v0 = vadd.f32 %v7794_v8, %v7793_v5  ;;  %v7775_v11 = vsel %vm8955_vm14, %v9520_v9, 0.0  ;;  %v9525_v12 = vpop.f32.mrb[3].mxu1 }
 0x539   : > { %v7783_v36 = vadd.f32 %v7782_v7, %v7775_v11  ;;  %v7795_v14 = vmul.f32 %v7775_v11, %v7775_v11  ;;  %v7776_v15 = vsel %vm8964_vm10, %v9525_v12, 0.0 }
 0x53a   : > { %v7796_v18 = vmul.f32 %v7776_v15, %v7776_v15 }
 0x53b   : > { %v7803_v42 = vadd.f32 %v7802_v0, %v7795_v14  ;;  %v7784_v48 = vadd.f32 %v7783_v36, %v7776_v15  ;;  %v7617_v44 = vpop.f32.mrb[4].mxu1 }
 0x53c   : > { %v7777_v58 = vsel %vm8990_vm8, %v7617_v44, 0.0  ;;  %v7619_v63 = vpop.f32.mrb[5].mxu1 }
 0x53d   : > { %v7804_v19 = vadd.f32 %v7803_v42, %v7796_v18  ;;  %v7785_v20 = vadd.f32 %v7784_v48, %v7777_v58  ;;  %v7797_v45 = vmul.f32 %v7777_v58, %v7777_v58  ;;  %v7778_v13 = vsel %vm9008_vm4, %v7619_v63, 0.0 }
 0x53e   : > { %v7798_v16 = vmul.f32 %v7778_v13, %v7778_v13 }
 0x53f   : > { %v7805_v21 = vadd.f32 %v7804_v19, %v7797_v45  ;;  %v7786_v22 = vadd.f32 %v7785_v20, %v7778_v13  ;;  %v7688_v23 = vpop.f32.mrb[6].mxu1 }
 0x540   : > { %v7779_v49 = vsel %vm9016_vm3, %v7688_v23, 0.0  ;;  %v7690_v25 = vpop.f32.mrb[7].mxu1 }
 0x541   : > { %v7806_v26 = vadd.f32 %v7805_v21, %v7798_v16  ;;  %v7787_v27 = vadd.f32 %v7786_v22, %v7779_v49  ;;  %v7799_v28 = vmul.f32 %v7779_v49, %v7779_v49  ;;  %v7780_v1 = vsel %vm9024_vm2, %v7690_v25, 0.0 }
 0x542   : > { %v7800_v29 = vmul.f32 %v7780_v1, %v7780_v1 }
 0x543   : > { %v7807_v31 = vadd.f32 %v7806_v26, %v7799_v28  ;;  %v7788_v32 = vadd.f32 %v7787_v27, %v7780_v1  ;;  %v7759_v33 = vpop.f32.mrb[8].mxu1 }
 0x544   : > { %v7781_v10 = vsel %vm9035_vm5, %v7759_v33, 0.0  ;;  %v8170_v34 = vpop.f32.mrb[9].mxu1 }
 0x545   : > { %v7808_v35 = vadd.f32 %v7807_v31, %v7800_v29  ;;  %v7789_v37 = vsel %vm9701_vm13, %v7781_v10, 0.0  ;;  %v7801_v17 = vmul.f32 %v7781_v10, %v7781_v10 }
 0x546   : > { %v7790_v38 = vadd.f32 %v7789_v37, %v7788_v32 }
 0x547   : > { %v7809_v39 = vsel %vm9702_vm6, %v7801_v17, 0.0 }
 0x548   : > { %7791 = vadd.xlane.f32.xlu1 %v7790_v38  ;;  %v7810_v40 = vadd.f32 %v7809_v39, %v7808_v35 }
 0x54a   : > { %7811 = vadd.xlane.f32.xlu0 %v7810_v40 }
 0x5d5   : > { %v7792_v24 = vpop.xlane.xlu1 %7791 }
 0x5d6   : > { %v7813_v41 = vmul.f32 0.0009765625, %v7792_v24 }
 0x5d7   : > { %v7812_v43 = vpop.xlane.xlu0 %7811 }
 0x5d8   : > { %v7814_v46 = vmul.f32 0.0009765625, %v7812_v43  ;;  %v7815_v47 = vmul.f32 %v7813_v41, %v7813_v41  ;;  %v7817_v51 = vsub.f32 %v9510_v2, %v7813_v41  ;;  %v7818_v53 = vsub.f32 %v9515_v4, %v7813_v41 }
 0x5d9   : > { %v7819_v54 = vsub.f32 %v9520_v9, %v7813_v41  ;;  %v7820_v55 = vsub.f32 %v9525_v12, %v7813_v41  ;;  %v7821_v56 = vsub.f32 %v7617_v44, %v7813_v41  ;;  %v7822_v59 = vsub.f32 %v7619_v63, %v7813_v41 }
 0x5da   : > { %v7816_v50 = vsub.f32 %v7814_v46, %v7815_v47  ;;  %v7823_v60 = vsub.f32 %v7688_v23, %v7813_v41  ;;  %v7824_v61 = vsub.f32 %v7690_v25, %v7813_v41  ;;  %v7825_v62 = vsub.f32 %v7759_v33, %v7813_v41 }
 0x5dc   : > { %v7826_v30 = vadd.f32 1e-05, %v7816_v50 }
 0x5de   : > { %8373 = vrsqrt.f32 %v7826_v30 }
 0x5e8   : > { %v8374_v57 = vpop.eup %8373 }
 0x5e9   : > { %v7828_v3 = vmul.f32 %v8374_v57, %v7817_v51  ;;  %v7829_v5 = vmul.f32 %v8374_v57, %v7818_v53  ;;  %v7830_v6 = vmul.f32 %v8374_v57, %v7819_v54  ;;  %v7831_v7 = vmul.f32 %v8374_v57, %v7820_v55 }
 0x5ea   : > { %v7832_v8 = vmul.f32 %v8374_v57, %v7821_v56  ;;  %v7833_v2 = vmul.f32 %v8374_v57, %v7822_v59  ;;  %v7834_v0 = vmul.f32 %v8374_v57, %v7823_v60  ;;  %v7835_v11 = vmul.f32 %v8374_v57, %v7824_v61 }
 0x5eb   : > { %v7836_v4 = vmul.f32 %v8374_v57, %v7825_v62  ;;  %vm7837_vm14 = vcmp.gt.f32.partialorder %v7828_v3, 0.0  ;;  %vm7838_vm10 = vcmp.gt.f32.partialorder %v7829_v5, 0.0  ;;  %vm7839_vm8 = vcmp.gt.f32.partialorder %v7830_v6, 0.0 }
 0x5ec   : > { %vm7840_vm4 = vcmp.gt.f32.partialorder %v7831_v7, 0.0  ;;  %vm7841_vm3 = vcmp.gt.f32.partialorder %v7832_v8, 0.0  ;;  %vm7842_vm2 = vcmp.gt.f32.partialorder %v7833_v2, 0.0  ;;  %vm7843_vm5 = vcmp.gt.f32.partialorder %v7834_v0, 0.0 }
 0x5ed   : > { %vm7844_vm9 = vcmp.gt.f32.partialorder %v7835_v11, 0.0  ;;  %vm7845_vm1 = vcmp.gt.f32.partialorder %v7836_v4, 0.0  ;;  %v7847_v9 = vmul.f32 %v7846_v52, %v7828_v3  ;;  %v7848_v12 = vmul.f32 %v7846_v52, %v7829_v5 }
 0x5ee   : > { %v7849_v36 = vmul.f32 %v7846_v52, %v7830_v6  ;;  %v7850_v14 = vmul.f32 %v7846_v52, %v7831_v7  ;;  %v7851_v15 = vmul.f32 %v7846_v52, %v7832_v8  ;;  %v7852_v18 = vmul.f32 %v7846_v52, %v7833_v2 }
 0x5ef   : > { %v7853_v42 = vmul.f32 %v7846_v52, %v7834_v0  ;;  %v7854_v48 = vmul.f32 %v7846_v52, %v7835_v11  ;;  %v7855_v44 = vmul.f32 %v7846_v52, %v7836_v4  ;;  %v7856_v58 = vsel %vm7837_vm14, %v7828_v3, %v7847_v9 }
 0x5f0   : > { %v7857_v63 = vsel %vm7838_vm10, %v7829_v5, %v7848_v12  ;;  %v7858_v19 = vsel %vm7839_vm8, %v7830_v6, %v7849_v36  ;;  %v7859_v20 = vsel %vm7840_vm4, %v7831_v7, %v7850_v14  ;;  %v7860_v45 = vsel %vm7841_vm3, %v7832_v8, %v7851_v15  ;;  %7865 = vst [vmem:[%s177_s0] sm:$0xff] %v7856_v58 }
 0x5f1   : > { %v7861_v13 = vsel %vm7842_vm2, %v7833_v2, %v7852_v18  ;;  %v7862_v16 = vsel %vm7843_vm5, %v7834_v0, %v7853_v42  ;;  %v7863_v21 = vsel %vm7844_vm9, %v7835_v11, %v7854_v48  ;;  %v7864_v22 = vsel %vm7845_vm1, %v7836_v4, %v7855_v44  ;;  %7866 = vst [vmem:[%s177_s0 + $0x8] sm:$0xff] %v7857_v63 }
 0x5f2   : > { %7867 = vst [vmem:[%s177_s0 + $0x10] sm:$0xff] %v7858_v19  ;;  %7868 = vst [vmem:[%s177_s0 + $0x18] sm:$0xff] %v7859_v20 }
 0x5f3   : > { %7869 = vst [vmem:[%s177_s0 + $0x20] sm:$0xff] %v7860_v45  ;;  %7870 = vst [vmem:[%s177_s0 + $0x28] sm:$0xff] %v7861_v13 }
 0x5f4   : > { %7871 = vst [vmem:[%s177_s0 + $0x30] sm:$0xff] %v7862_v16  ;;  %7872 = vst [vmem:[%s177_s0 + $0x38] sm:$0xff] %v7863_v21 }
 0x5f5   : > { %7873 = vst.msk [vmem:[%s177_s0 + $0x40] sm:$0xff] %vm9703_vm7, %v7864_v22 }
 0x5f6 PF: > { %s20_s20 = sadd.s32 1, %s8395_s20  }
 0x5f7   : > { %p17_p9 = scmp.ge.s32.totalorder %s20_s20, 4  }
 0x5f9   :  { %19 = sbr.rel (!%p17_p9) target bundleno = 16 (0x10), region = 78 }

</bundles_post_ra>
